<compile_context>
chip_gen: v7x
topology: tpu7x:2x2x1
jax: 0.10.0
libtpu: 0.0.40
codegen_flags: <defaults>
</compile_context>

<pallas_src>
import functools
import math

import jax
import jax.numpy as jnp
from jax import lax
from jax.experimental import pallas as pl
from jax.experimental.pallas import tpu as pltpu

# ----------------------------------------------------------------------------
# Exact GELU (erf-based, as in nn.TransformerEncoderLayer(activation='gelu')).
# erf via XLA's float32 rational approximation; the divide goes through the EUP
# approximate reciprocal + one Newton refinement (keeps the large FFN tensor
# off the VPU divide path).
# ----------------------------------------------------------------------------
_ERF_ALPHA = (0.00022905065861350646, 0.0034082910107109506,
              0.050955695062380861, 0.18520832239976145, 1.128379143519084)
_ERF_BETA = (-1.1791602954361697e-7, 0.000023547966471313185,
             0.0010179625278914885, 0.014070470171167667,
             0.11098505178285362, 0.49746925110067538, 1.0)


def _erf(x):
    x = jnp.clip(x, -4.0, 4.0)
    z = x * x
    num = jnp.full_like(z, _ERF_ALPHA[0])
    for c in _ERF_ALPHA[1:]:
        num = num * z + c
    den = jnp.full_like(z, _ERF_BETA[0])
    for c in _ERF_BETA[1:]:
        den = den * z + c
    r = pl.reciprocal(den, approx=True)   # EUP slot (nearly free)
    r = r * (2.0 - den * r)               # one Newton step -> ~f32 accuracy
    return x * num * r


def _gelu_exact(x):
    return 0.5 * x * (1.0 + _erf(x * (1.0 / math.sqrt(2.0))))


def _layer_norm(x, w, b, eps=1e-5):
    mean = jnp.mean(x, axis=-1, keepdims=True)
    xc = x - mean
    var = jnp.mean(xc * xc, axis=-1, keepdims=True)
    return xc * lax.rsqrt(var + eps) * w + b


# ----------------------------------------------------------------------------
# Fused encoder stack kernel. Grid = (batch_blocks, n_layers); the output block
# (same block index across the layer axis) is the resident activation.
# ----------------------------------------------------------------------------
def _encoder_stack_kernel(x_ref, win_ref, bin_ref, wout_ref, bout_ref,
                          ln1w_ref, ln1b_ref, w1_ref, b1_ref, w2_ref, b2_ref,
                          ln2w_ref, ln2b_ref, o_ref, *, n_head):
    layer = pl.program_id(1)

    @pl.when(layer == 0)
    def _():
        o_ref[...] = x_ref[...]                  # seed the resident activation

    bt, S, D = o_ref.shape
    hd = D // n_head
    N = bt * S

    x = o_ref[...].reshape(N, D)                 # f32 activation, VMEM resident
    x_bf = x.astype(jnp.bfloat16)

    # --- fused QKV projection (1/sqrt(hd) pre-folded into the Q columns) -----
    qkv = jnp.dot(x_bf, win_ref[0],
                  preferred_element_type=jnp.float32) + bin_ref[0]
    qkv = qkv.astype(jnp.bfloat16)               # cast BEFORE any layout shuffle

    # --- head split: one lane-split reshape + one lane-aware transpose -------
    # (replaces 3*n_head unaligned lane slices + 2 concats per layer)
    qkv = qkv.reshape(N, 3 * n_head, hd)         # (N, 3H, hd)
    qkv = pltpu.einshape("mhd->hmd", qkv)        # (3H, N, hd)
    qkv = qkv.reshape(3 * n_head, bt, S, hd)     # free major split
    qh = qkv[:n_head].reshape(n_head * bt, S, hd)
    kh = qkv[n_head:2 * n_head].reshape(n_head * bt, S, hd)
    vh = qkv[2 * n_head:].reshape(n_head * bt, S, hd)

    # --- attention, heads folded into the batch dim of the einsums -----------
    # TODO(synk): for long sequences, block the KV axis (flash-style online
    # softmax) so the (H*bt, S, S) scores tensor stays bounded in VMEM.
    s = jnp.einsum('bqc,bkc->bqk', qh, kh, preferred_element_type=jnp.float32)
    s = s - jnp.max(s, axis=-1, keepdims=True)
    p = jnp.exp(s)
    denom = jnp.sum(p, axis=-1, keepdims=True)   # (H*bt, S, 1)
    ctx = jnp.einsum('bqk,bkc->bqc', p.astype(jnp.bfloat16), vh,
                     preferred_element_type=jnp.float32)   # (H*bt, S, hd) f32
    # Normalize on ctx (S*hd muls instead of S*S), exact reciprocal.
    ctx = ctx * pl.reciprocal(denom)
    ctx = ctx.astype(jnp.bfloat16)               # cast BEFORE the merge shuffle

    # --- head merge back to (N, D) --------------------------------------------
    ctx = ctx.reshape(n_head, N, hd)             # free major merge
    ctx = pltpu.einshape("hmd->mhd", ctx)        # (N, H, hd)
    attn = ctx.reshape(N, D)

    # Output projection + residual + LayerNorm1 (post-norm).
    attn = jnp.dot(attn, wout_ref[0],
                   preferred_element_type=jnp.float32) + bout_ref[0]
    # TODO(synk): dropout (p=0.1) omitted — eval-mode (identity) semantics.
    y = _layer_norm(x + attn, ln1w_ref[0], ln1b_ref[0])

    # Feed-forward: linear1 -> gelu -> linear2, residual + LayerNorm2.
    h1 = jnp.dot(y.astype(jnp.bfloat16), w1_ref[0],
                 preferred_element_type=jnp.float32) + b1_ref[0]
    h1 = _gelu_exact(h1)
    z = jnp.dot(h1.astype(jnp.bfloat16), w2_ref[0],
                preferred_element_type=jnp.float32) + b2_ref[0]
    out = _layer_norm(y + z, ln2w_ref[0], ln2b_ref[0])

    o_ref[...] = out.reshape(bt, S, D)           # carried to the next layer


_WEIGHT_ORDER = ("win_t", "bin", "wout_t", "bout", "ln1_w", "ln1_b",
                 "w1_t", "b1", "w2_t", "b2", "ln2_w", "ln2_b")


def _block_weight_bytes(params):
    return sum(math.prod(params[k].shape[1:]) * params[k].dtype.itemsize
               for k in _WEIGHT_ORDER)


def _estimate_vmem_bytes(bt, S, D, d_hid, n_head, weight_bytes):
    act = bt * S * D * 4                          # resident activation block (f32)
    qkv = bt * S * 3 * D * 2                      # bf16 qkv
    scores = n_head * bt * S * S * 4 * 2          # s and p (f32)
    ffn = bt * S * d_hid * 4 * 2                  # h1 + gelu temporaries (f32)
    # double-buffered weights + double-buffered in/out activation blocks + temps.
    return 2 * weight_bytes + 4 * act + qkv + scores + ffn + (2 << 20)


def encoder_forward(src, params, n_head, batch_block=None, vmem_limit_bytes=None):
    """src: (S, B, D) float32, like PyTorch TransformerEncoder (batch_first=False).

    batch_block: rows of B per grid step. Default: B (single block -> each
    layer's weights DMA'd exactly once, right for v5e/v6e), halved as needed to
    (a) give >=2 parallel blocks when the device exposes 2 TensorCores (v7x)
    and (b) keep the attention/FFN temporaries inside the VMEM budget.
    """
    # TODO(synk): src_mask / src_key_padding_mask not supported (None in this usage).
    S, B, D = src.shape
    n_layers = params["win_t"].shape[0]
    d_hid = params["w1_t"].shape[-1]
    assert D % n_head == 0

    try:
        vmem_cap = int(pltpu.get_tpu_info().vmem_capacity_bytes)
    except Exception:
        vmem_cap = 64 << 20                       # conservative default (v7x-sized)
    budget = int(0.80 * vmem_cap)
    w_bytes = _block_weight_bytes(params)

    if batch_block is None:
        bt = B
        # v7x megacore: keep >= 2 blocks on the "parallel" batch axis when the
        # device has 2 TensorCores (best-effort detection; 1 TC on v5e/v6e).
        n_cores = 1
        try:
            n_cores = max(1, int(getattr(jax.devices()[0], "num_cores", 1)))
        except Exception:
            pass
        while bt > 1 and bt % 2 == 0 and (B // bt) < n_cores:
            bt //= 2
        # Cap bt so scores / FFN temporaries fit the per-generation VMEM budget.
        while bt > 1 and bt % 2 == 0 and \
                _estimate_vmem_bytes(bt, S, D, d_hid, n_head, w_bytes) > budget:
            bt //= 2
    else:
        bt = batch_block
    assert B % bt == 0

    if vmem_limit_bytes is None:
        est = _estimate_vmem_bytes(bt, S, D, d_hid, n_head, w_bytes)
        vmem_limit_bytes = max(32 << 20, min(int(1.25 * est), budget))

    x = jnp.transpose(src, (1, 0, 2))             # one transpose for the whole stack
    weights = [params[k] for k in _WEIGHT_ORDER]

    def wspec(a):
        n_rest = a.ndim - 1
        return pl.BlockSpec((1,) + a.shape[1:],
                            lambda b, l, _n=n_rest: (l,) + (0,) * _n)

    # TODO(synk): the x input is only read at layer==0 but is default
    # double-buffered; pipeline_mode=pl.Buffered(1) would free one block of VMEM.
    kernel = functools.partial(_encoder_stack_kernel, n_head=n_head)
    out = pl.pallas_call(
        kernel,
        out_shape=jax.ShapeDtypeStruct((B, S, D), jnp.float32),
        grid_spec=pltpu.PrefetchScalarGridSpec(
            num_scalar_prefetch=0,
            grid=(B // bt, n_layers),
            in_specs=[pl.BlockSpec((bt, S, D), lambda b, l: (b, 0, 0))]
                     + [wspec(w) for w in weights],
            out_specs=pl.BlockSpec((bt, S, D), lambda b, l: (b, 0, 0))),
        compiler_params=pltpu.CompilerParams(
            dimension_semantics=("parallel", "arbitrary"),
            vmem_limit_bytes=int(vmem_limit_bytes)),
    )(x, *weights)
    return jnp.transpose(out, (1, 0, 2))          # back to (S, B, D)


# ----------------------------------------------------------------------------
# Deterministic parameter init (same shapes as nn.TransformerEncoderLayer).
# Linear weights are stored pre-transposed (in, out), stacked over layers, and
# cast to bf16 for the MXU; biases / LayerNorm params stay f32. The attention
# scale 1/sqrt(head_dim) is folded into the Q columns of in_proj.
# ----------------------------------------------------------------------------
def init_params(key, d_model, n_head, d_hid, n_layers):
    hd = d_model // n_head
    q_scale = jnp.concatenate(
        [jnp.full((d_model,), 1.0 / math.sqrt(hd), jnp.float32),
         jnp.ones((2 * d_model,), jnp.float32)])

    def normal(k, shape, scale=0.05):
        return (scale * jax.random.normal(k, shape)).astype(jnp.float32)

    acc = {k: [] for k in _WEIGHT_ORDER}
    for i in range(n_layers):
        ks = jax.random.split(jax.random.fold_in(key, i), 8)
        win = normal(ks[0], (3 * d_model, d_model))    # in_proj_weight
        bin_ = normal(ks[1], (3 * d_model,))           # in_proj_bias
        wout = normal(ks[2], (d_model, d_model))       # out_proj.weight
        bout = normal(ks[3], (d_model,))               # out_proj.bias
        w1 = normal(ks[4], (d_hid, d_model))           # linear1.weight
        b1 = normal(ks[5], (d_hid,))                   # linear1.bias
        w2 = normal(ks[6], (d_model, d_hid))           # linear2.weight
        b2 = normal(ks[7], (d_model,))                 # linear2.bias

        acc["win_t"].append((win.T * q_scale[None, :]).astype(jnp.bfloat16))
        acc["bin"].append((bin_ * q_scale).reshape(1, -1))
        acc["wout_t"].append(wout.T.astype(jnp.bfloat16))
        acc["bout"].append(bout.reshape(1, -1))
        acc["w1_t"].append(w1.T.astype(jnp.bfloat16))
        acc["b1"].append(b1.reshape(1, -1))
        acc["w2_t"].append(w2.T.astype(jnp.bfloat16))
        acc["b2"].append(b2.reshape(1, -1))
        acc["ln1_w"].append(jnp.ones((1, d_model), jnp.float32))
        acc["ln1_b"].append(jnp.zeros((1, d_model), jnp.float32))
        acc["ln2_w"].append(jnp.ones((1, d_model), jnp.float32))
        acc["ln2_b"].append(jnp.zeros((1, d_model), jnp.float32))

    return {k: jnp.stack(v, axis=0) for k, v in acc.items()}


if __name__ == "__main__":
    # TODO(synk): demo shapes (D=32, hd=8, S=8) are far below the (8,128)/MXU
    # tiling minimums; benchmark at lane-dense sizes (D, d_hid multiples of 128).
    D_MODEL, N_HEAD, D_HID, N_LAYERS = 32, 4, 64, 2
    SEQ, BATCH = 8, 2

    key = jax.random.PRNGKey(0)
    k_src, k_par = jax.random.split(key)
    src = jax.random.normal(k_src, (SEQ, BATCH, D_MODEL), dtype=jnp.float32)
    params = init_params(k_par, D_MODEL, N_HEAD, D_HID, N_LAYERS)

    out = encoder_forward(src, params, N_HEAD)
    out = jax.block_until_ready(out)
    assert out.shape == (SEQ, BATCH, D_MODEL) and out.dtype == jnp.float32
    print("KERNEL_OK")
</pallas_src>

<mosaic_0001>
module attributes {stable_mosaic.version = 11 : i64} {
  func.func @_encoder_stack_kernel(%arg0: i32, %arg1: i32, %arg2: memref<2x8x32xf32, #tpu.memory_space<vmem>>, %arg3: memref<1x32x96xbf16, #tpu.memory_space<vmem>>, %arg4: memref<1x1x96xf32, #tpu.memory_space<vmem>>, %arg5: memref<1x32x32xbf16, #tpu.memory_space<vmem>>, %arg6: memref<1x1x32xf32, #tpu.memory_space<vmem>>, %arg7: memref<1x1x32xf32, #tpu.memory_space<vmem>>, %arg8: memref<1x1x32xf32, #tpu.memory_space<vmem>>, %arg9: memref<1x32x64xbf16, #tpu.memory_space<vmem>>, %arg10: memref<1x1x64xf32, #tpu.memory_space<vmem>>, %arg11: memref<1x64x32xbf16, #tpu.memory_space<vmem>>, %arg12: memref<1x1x32xf32, #tpu.memory_space<vmem>>, %arg13: memref<1x1x32xf32, #tpu.memory_space<vmem>>, %arg14: memref<1x1x32xf32, #tpu.memory_space<vmem>>, %arg15: memref<2x8x32xf32, #tpu.memory_space<vmem>>) attributes {dimension_semantics = [#tpu.dimension_semantics<parallel>, #tpu.dimension_semantics<arbitrary>], iteration_bounds = array<i64: 1, 2>, scalar_prefetch = 0 : i64, scratch_operands = 0 : i64, tpu.core_type = #tpu.core_type<tc>, window_params = [{transform_indices = @transform_0, window_bounds = array<i64: 2, 8, 32>}, {transform_indices = @transform_1, window_bounds = array<i64: 1, 32, 96>}, {transform_indices = @transform_2, window_bounds = array<i64: 1, 1, 96>}, {transform_indices = @transform_3, window_bounds = array<i64: 1, 32, 32>}, {transform_indices = @transform_4, window_bounds = array<i64: 1, 1, 32>}, {transform_indices = @transform_5, window_bounds = array<i64: 1, 1, 32>}, {transform_indices = @transform_6, window_bounds = array<i64: 1, 1, 32>}, {transform_indices = @transform_7, window_bounds = array<i64: 1, 32, 64>}, {transform_indices = @transform_8, window_bounds = array<i64: 1, 1, 64>}, {transform_indices = @transform_9, window_bounds = array<i64: 1, 64, 32>}, {transform_indices = @transform_10, window_bounds = array<i64: 1, 1, 32>}, {transform_indices = @transform_11, window_bounds = array<i64: 1, 1, 32>}, {transform_indices = @transform_12, window_bounds = array<i64: 1, 1, 32>}, {transform_indices = @transform_13, window_bounds = array<i64: 2, 8, 32>}]} {
    %c0_i32 = arith.constant 0 : i32
    %0 = arith.cmpi eq, %arg1, %c0_i32 : i32
    %1 = arith.extui %0 : i1 to i32
    %c0_i32_0 = arith.constant 0 : i32
    %2 = arith.cmpi ne, %1, %c0_i32_0 : i32
    scf.if %2 {
      %c0_77 = arith.constant 0 : index
      %c0_78 = arith.constant 0 : index
      %c0_79 = arith.constant 0 : index
      %166 = vector.load %arg2[%c0_77, %c0_78, %c0_79] : memref<2x8x32xf32, #tpu.memory_space<vmem>>, vector<2x8x32xf32>
      %c0_80 = arith.constant 0 : index
      %c0_81 = arith.constant 0 : index
      %c0_82 = arith.constant 0 : index
      %167 = vector.load %arg15[%c0_80, %c0_81, %c0_82] : memref<2x8x32xf32, #tpu.memory_space<vmem>>, vector<2x8x32xf32>
      tpu.vector_store %arg15[%c0_80, %c0_81, %c0_82], %166 {strides = array<i32>} : memref<2x8x32xf32, #tpu.memory_space<vmem>>, vector<2x8x32xf32>,
    } else {
    }
    %c0 = arith.constant 0 : index
    %c0_1 = arith.constant 0 : index
    %c0_2 = arith.constant 0 : index
    %3 = vector.load %arg15[%c0, %c0_1, %c0_2] : memref<2x8x32xf32, #tpu.memory_space<vmem>>, vector<2x8x32xf32>
    %4 = vector.shape_cast %3 : vector<2x8x32xf32> to vector<16x32xf32>
    %5 = arith.truncf %4 : vector<16x32xf32> to vector<16x32xbf16>
    %c0_3 = arith.constant 0 : index
    %c0_4 = arith.constant 0 : index
    %c0_5 = arith.constant 0 : index
    %6 = vector.load %arg3[%c0_3, %c0_4, %c0_5] : memref<1x32x96xbf16, #tpu.memory_space<vmem>>, vector<1x32x96xbf16>
    %7 = vector.shape_cast %6 : vector<1x32x96xbf16> to vector<32x96xbf16>
    %cst = arith.constant dense<0.000000e+00> : vector<16x96xf32>
    %8 = tpu.matmul %5, %7, %cst {dimension_numbers = #tpu.dot_dimension_numbers<[1], [0], [0], [1], [0, 0, 1, 1], [], []>} : vector<16x32xbf16>, vector<32x96xbf16>, vector<16x96xf32> -> vector<16x96xf32>
    %c0_6 = arith.constant 0 : index
    %c0_7 = arith.constant 0 : index
    %c0_8 = arith.constant 0 : index
    %9 = vector.load %arg4[%c0_6, %c0_7, %c0_8] : memref<1x1x96xf32, #tpu.memory_space<vmem>>, vector<1x1x96xf32>
    %10 = vector.shape_cast %9 : vector<1x1x96xf32> to vector<1x96xf32>
    %11 = vector.broadcast %10 : vector<1x96xf32> to vector<16x96xf32>
    %12 = arith.addf %8, %11 : vector<16x96xf32>
    %13 = arith.truncf %12 : vector<16x96xf32> to vector<16x96xbf16>
    %14 = vector.shape_cast %13 : vector<16x96xbf16> to vector<16x12x8xbf16>
    %15 = tpu.transpose %14, [1, 0, 2] : vector<16x12x8xbf16> -> vector<12x16x8xbf16>
    %16 = vector.shape_cast %15 : vector<12x16x8xbf16> to vector<12x2x8x8xbf16>
    %17 = vector.extract_strided_slice %16 {offsets = [0, 0, 0, 0], sizes = [4, 2, 8, 8], strides = [1, 1, 1, 1]} : vector<12x2x8x8xbf16> to vector<4x2x8x8xbf16>
    %18 = vector.shape_cast %17 : vector<4x2x8x8xbf16> to vector<8x8x8xbf16>
    %19 = vector.extract_strided_slice %16 {offsets = [4, 0, 0, 0], sizes = [4, 2, 8, 8], strides = [1, 1, 1, 1]} : vector<12x2x8x8xbf16> to vector<4x2x8x8xbf16>
    %20 = vector.shape_cast %19 : vector<4x2x8x8xbf16> to vector<8x8x8xbf16>
    %21 = vector.extract_strided_slice %16 {offsets = [8, 0, 0, 0], sizes = [4, 2, 8, 8], strides = [1, 1, 1, 1]} : vector<12x2x8x8xbf16> to vector<4x2x8x8xbf16>
    %22 = vector.shape_cast %21 : vector<4x2x8x8xbf16> to vector<8x8x8xbf16>
    "tpu.trace_start"() <{level = 10 : i32, message = "bqc,bkc->bqk"}> : () -> ()
    %cst_9 = arith.constant dense<0.000000e+00> : vector<8x8x8xf32>
    %23 = tpu.matmul %18, %20, %cst_9 {dimension_numbers = #tpu.dot_dimension_numbers<[2], [2], [1], [1], [0, 0, 0, 1, 1, 1], [0], [0]>} : vector<8x8x8xbf16>, vector<8x8x8xbf16>, vector<8x8x8xf32> -> vector<8x8x8xf32>
    "tpu.trace_stop"() : () -> ()
    %cst_10 = arith.constant dense<0xFF800000> : vector<8x8xf32>
    %24 = vector.multi_reduction <maximumf>, %23, %cst_10 [2] : vector<8x8x8xf32> to vector<8x8xf32>
    %25 = vector.shape_cast %24 : vector<8x8xf32> to vector<8x8x1xf32>
    %26 = vector.broadcast %25 : vector<8x8x1xf32> to vector<8x8x8xf32>
    %27 = arith.subf %23, %26 : vector<8x8x8xf32>
    %28 = math.exp %27 : vector<8x8x8xf32>
    %cst_11 = arith.constant dense<0.000000e+00> : vector<8x8xf32>
    %29 = vector.multi_reduction <add>, %28, %cst_11 [2] : vector<8x8x8xf32> to vector<8x8xf32>
    %30 = vector.shape_cast %29 : vector<8x8xf32> to vector<8x8x1xf32>
    %31 = arith.truncf %28 : vector<8x8x8xf32> to vector<8x8x8xbf16>
    "tpu.trace_start"() <{level = 10 : i32, message = "bqk,bkc->bqc"}> : () -> ()
    %cst_12 = arith.constant dense<0.000000e+00> : vector<8x8x8xf32>
    %32 = tpu.matmul %31, %22, %cst_12 {dimension_numbers = #tpu.dot_dimension_numbers<[2], [1], [1], [2], [0, 0, 0, 1, 1, 2], [0], [0]>} : vector<8x8x8xbf16>, vector<8x8x8xbf16>, vector<8x8x8xf32> -> vector<8x8x8xf32>
    "tpu.trace_stop"() : () -> ()
    %33 = tpu.reciprocal %30 : vector<8x8x1xf32> -> vector<8x8x1xf32>
    %34 = vector.broadcast %33 : vector<8x8x1xf32> to vector<8x8x8xf32>
    %35 = arith.mulf %32, %34 : vector<8x8x8xf32>
    %36 = arith.truncf %35 : vector<8x8x8xf32> to vector<8x8x8xbf16>
    %37 = vector.shape_cast %36 : vector<8x8x8xbf16> to vector<4x16x8xbf16>
    %38 = tpu.transpose %37, [1, 0, 2] : vector<4x16x8xbf16> -> vector<16x4x8xbf16>
    %39 = vector.shape_cast %38 : vector<16x4x8xbf16> to vector<16x32xbf16>
    %c0_13 = arith.constant 0 : index
    %c0_14 = arith.constant 0 : index
    %c0_15 = arith.constant 0 : index
    %40 = vector.load %arg5[%c0_13, %c0_14, %c0_15] : memref<1x32x32xbf16, #tpu.memory_space<vmem>>, vector<1x32x32xbf16>
    %41 = vector.shape_cast %40 : vector<1x32x32xbf16> to vector<32x32xbf16>
    %cst_16 = arith.constant dense<0.000000e+00> : vector<16x32xf32>
    %42 = tpu.matmul %39, %41, %cst_16 {dimension_numbers = #tpu.dot_dimension_numbers<[1], [0], [0], [1], [0, 0, 1, 1], [], []>} : vector<16x32xbf16>, vector<32x32xbf16>, vector<16x32xf32> -> vector<16x32xf32>
    %c0_17 = arith.constant 0 : index
    %c0_18 = arith.constant 0 : index
    %c0_19 = arith.constant 0 : index
    %43 = vector.load %arg6[%c0_17, %c0_18, %c0_19] : memref<1x1x32xf32, #tpu.memory_space<vmem>>, vector<1x1x32xf32>
    %44 = vector.shape_cast %43 : vector<1x1x32xf32> to vector<1x32xf32>
    %45 = vector.broadcast %44 : vector<1x32xf32> to vector<16x32xf32>
    %46 = arith.addf %42, %45 : vector<16x32xf32>
    %47 = arith.addf %4, %46 : vector<16x32xf32>
    %c0_20 = arith.constant 0 : index
    %c0_21 = arith.constant 0 : index
    %c0_22 = arith.constant 0 : index
    %48 = vector.load %arg7[%c0_20, %c0_21, %c0_22] : memref<1x1x32xf32, #tpu.memory_space<vmem>>, vector<1x1x32xf32>
    %49 = vector.shape_cast %48 : vector<1x1x32xf32> to vector<1x32xf32>
    %c0_23 = arith.constant 0 : index
    %c0_24 = arith.constant 0 : index
    %c0_25 = arith.constant 0 : index
    %50 = vector.load %arg8[%c0_23, %c0_24, %c0_25] : memref<1x1x32xf32, #tpu.memory_space<vmem>>, vector<1x1x32xf32>
    %51 = vector.shape_cast %50 : vector<1x1x32xf32> to vector<1x32xf32>
    %cst_26 = arith.constant dense<0.000000e+00> : vector<16xf32>
    %52 = vector.multi_reduction <add>, %47, %cst_26 [1] : vector<16x32xf32> to vector<16xf32>
    %53 = vector.shape_cast %52 : vector<16xf32> to vector<16x1xf32>
    %cst_27 = arith.constant 3.200000e+01 : f32
    %54 = vector.broadcast %cst_27 : f32 to vector<16x1xf32>
    %55 = arith.divf %53, %54 : vector<16x1xf32>
    %56 = vector.broadcast %55 : vector<16x1xf32> to vector<16x32xf32>
    %57 = arith.subf %47, %56 : vector<16x32xf32>
    %58 = arith.mulf %57, %57 : vector<16x32xf32>
    %cst_28 = arith.constant dense<0.000000e+00> : vector<16xf32>
    %59 = vector.multi_reduction <add>, %58, %cst_28 [1] : vector<16x32xf32> to vector<16xf32>
    %60 = vector.shape_cast %59 : vector<16xf32> to vector<16x1xf32>
    %cst_29 = arith.constant 3.200000e+01 : f32
    %61 = vector.broadcast %cst_29 : f32 to vector<16x1xf32>
    %62 = arith.divf %60, %61 : vector<16x1xf32>
    %cst_30 = arith.constant 9.99999974E-6 : f32
    %63 = vector.broadcast %cst_30 : f32 to vector<16x1xf32>
    %64 = arith.addf %62, %63 : vector<16x1xf32>
    %65 = math.rsqrt %64 : vector<16x1xf32>
    %66 = vector.broadcast %65 : vector<16x1xf32> to vector<16x32xf32>
    %67 = arith.mulf %57, %66 : vector<16x32xf32>
    %68 = vector.broadcast %49 : vector<1x32xf32> to vector<16x32xf32>
    %69 = arith.mulf %67, %68 : vector<16x32xf32>
    %70 = vector.broadcast %51 : vector<1x32xf32> to vector<16x32xf32>
    %71 = arith.addf %69, %70 : vector<16x32xf32>
    %72 = arith.truncf %71 : vector<16x32xf32> to vector<16x32xbf16>
    %c0_31 = arith.constant 0 : index
    %c0_32 = arith.constant 0 : index
    %c0_33 = arith.constant 0 : index
    %73 = vector.load %arg9[%c0_31, %c0_32, %c0_33] : memref<1x32x64xbf16, #tpu.memory_space<vmem>>, vector<1x32x64xbf16>
    %74 = vector.shape_cast %73 : vector<1x32x64xbf16> to vector<32x64xbf16>
    %cst_34 = arith.constant dense<0.000000e+00> : vector<16x64xf32>
    %75 = tpu.matmul %72, %74, %cst_34 {dimension_numbers = #tpu.dot_dimension_numbers<[1], [0], [0], [1], [0, 0, 1, 1], [], []>} : vector<16x32xbf16>, vector<32x64xbf16>, vector<16x64xf32> -> vector<16x64xf32>
    %c0_35 = arith.constant 0 : index
    %c0_36 = arith.constant 0 : index
    %c0_37 = arith.constant 0 : index
    %76 = vector.load %arg10[%c0_35, %c0_36, %c0_37] : memref<1x1x64xf32, #tpu.memory_space<vmem>>, vector<1x1x64xf32>
    %77 = vector.shape_cast %76 : vector<1x1x64xf32> to vector<1x64xf32>
    %78 = vector.broadcast %77 : vector<1x64xf32> to vector<16x64xf32>
    %79 = arith.addf %75, %78 : vector<16x64xf32>
    %cst_38 = arith.constant 5.000000e-01 : f32
    %80 = vector.broadcast %cst_38 : f32 to vector<16x64xf32>
    %81 = arith.mulf %80, %79 : vector<16x64xf32>
    %cst_39 = arith.constant 0.707106769 : f32
    %82 = vector.broadcast %cst_39 : f32 to vector<16x64xf32>
    %83 = arith.mulf %79, %82 : vector<16x64xf32>
    %cst_40 = arith.constant -4.000000e+00 : f32
    %cst_41 = arith.constant 4.000000e+00 : f32
    %84 = vector.broadcast %cst_40 : f32 to vector<16x64xf32>
    %85 = arith.maximumf %84, %83 : vector<16x64xf32>
    %86 = vector.broadcast %cst_41 : f32 to vector<16x64xf32>
    %87 = arith.minimumf %86, %85 : vector<16x64xf32>
    %88 = arith.mulf %87, %87 : vector<16x64xf32>
    %cst_42 = arith.constant 2.29050653E-4 : f32
    %89 = vector.broadcast %cst_42 : f32 to vector<16x64xf32>
    %90 = arith.mulf %89, %88 : vector<16x64xf32>
    %cst_43 = arith.constant 0.00340829091 : f32
    %91 = vector.broadcast %cst_43 : f32 to vector<16x64xf32>
    %92 = arith.addf %90, %91 : vector<16x64xf32>
    %93 = arith.mulf %92, %88 : vector<16x64xf32>
    %cst_44 = arith.constant 0.0509556942 : f32
    %94 = vector.broadcast %cst_44 : f32 to vector<16x64xf32>
    %95 = arith.addf %93, %94 : vector<16x64xf32>
    %96 = arith.mulf %95, %88 : vector<16x64xf32>
    %cst_45 = arith.constant 0.185208321 : f32
    %97 = vector.broadcast %cst_45 : f32 to vector<16x64xf32>
    %98 = arith.addf %96, %97 : vector<16x64xf32>
    %99 = arith.mulf %98, %88 : vector<16x64xf32>
    %cst_46 = arith.constant 1.12837911 : f32
    %100 = vector.broadcast %cst_46 : f32 to vector<16x64xf32>
    %101 = arith.addf %99, %100 : vector<16x64xf32>
    %cst_47 = arith.constant -1.17916031E-7 : f32
    %102 = vector.broadcast %cst_47 : f32 to vector<16x64xf32>
    %103 = arith.mulf %102, %88 : vector<16x64xf32>
    %cst_48 = arith.constant 2.35479656E-5 : f32
    %104 = vector.broadcast %cst_48 : f32 to vector<16x64xf32>
    %105 = arith.addf %103, %104 : vector<16x64xf32>
    %106 = arith.mulf %105, %88 : vector<16x64xf32>
    %cst_49 = arith.constant 0.00101796258 : f32
    %107 = vector.broadcast %cst_49 : f32 to vector<16x64xf32>
    %108 = arith.addf %106, %107 : vector<16x64xf32>
    %109 = arith.mulf %108, %88 : vector<16x64xf32>
    %cst_50 = arith.constant 0.0140704699 : f32
    %110 = vector.broadcast %cst_50 : f32 to vector<16x64xf32>
    %111 = arith.addf %109, %110 : vector<16x64xf32>
    %112 = arith.mulf %111, %88 : vector<16x64xf32>
    %cst_51 = arith.constant 0.110985048 : f32
    %113 = vector.broadcast %cst_51 : f32 to vector<16x64xf32>
    %114 = arith.addf %112, %113 : vector<16x64xf32>
    %115 = arith.mulf %114, %88 : vector<16x64xf32>
    %cst_52 = arith.constant 0.497469246 : f32
    %116 = vector.broadcast %cst_52 : f32 to vector<16x64xf32>
    %117 = arith.addf %115, %116 : vector<16x64xf32>
    %118 = arith.mulf %117, %88 : vector<16x64xf32>
    %cst_53 = arith.constant 1.000000e+00 : f32
    %119 = vector.broadcast %cst_53 : f32 to vector<16x64xf32>
    %120 = arith.addf %118, %119 : vector<16x64xf32>
    %121 = tpu.reciprocal %120 {approx = true} : vector<16x64xf32> -> vector<16x64xf32>
    %122 = arith.mulf %120, %121 : vector<16x64xf32>
    %cst_54 = arith.constant 2.000000e+00 : f32
    %123 = vector.broadcast %cst_54 : f32 to vector<16x64xf32>
    %124 = arith.subf %123, %122 : vector<16x64xf32>
    %125 = arith.mulf %121, %124 : vector<16x64xf32>
    %126 = arith.mulf %87, %101 : vector<16x64xf32>
    %127 = arith.mulf %126, %125 : vector<16x64xf32>
    %cst_55 = arith.constant 1.000000e+00 : f32
    %128 = vector.broadcast %cst_55 : f32 to vector<16x64xf32>
    %129 = arith.addf %128, %127 : vector<16x64xf32>
    %130 = arith.mulf %81, %129 : vector<16x64xf32>
    %131 = arith.truncf %130 : vector<16x64xf32> to vector<16x64xbf16>
    %c0_56 = arith.constant 0 : index
    %c0_57 = arith.constant 0 : index
    %c0_58 = arith.constant 0 : index
    %132 = vector.load %arg11[%c0_56, %c0_57, %c0_58] : memref<1x64x32xbf16, #tpu.memory_space<vmem>>, vector<1x64x32xbf16>
    %133 = vector.shape_cast %132 : vector<1x64x32xbf16> to vector<64x32xbf16>
    %cst_59 = arith.constant dense<0.000000e+00> : vector<16x32xf32>
    %134 = tpu.matmul %131, %133, %cst_59 {dimension_numbers = #tpu.dot_dimension_numbers<[1], [0], [0], [1], [0, 0, 1, 1], [], []>} : vector<16x64xbf16>, vector<64x32xbf16>, vector<16x32xf32> -> vector<16x32xf32>
    %c0_60 = arith.constant 0 : index
    %c0_61 = arith.constant 0 : index
    %c0_62 = arith.constant 0 : index
    %135 = vector.load %arg12[%c0_60, %c0_61, %c0_62] : memref<1x1x32xf32, #tpu.memory_space<vmem>>, vector<1x1x32xf32>
    %136 = vector.shape_cast %135 : vector<1x1x32xf32> to vector<1x32xf32>
    %137 = vector.broadcast %136 : vector<1x32xf32> to vector<16x32xf32>
    %138 = arith.addf %134, %137 : vector<16x32xf32>
    %139 = arith.addf %71, %138 : vector<16x32xf32>
    %c0_63 = arith.constant 0 : index
    %c0_64 = arith.constant 0 : index
    %c0_65 = arith.constant 0 : index
    %140 = vector.load %arg13[%c0_63, %c0_64, %c0_65] : memref<1x1x32xf32, #tpu.memory_space<vmem>>, vector<1x1x32xf32>
    %141 = vector.shape_cast %140 : vector<1x1x32xf32> to vector<1x32xf32>
    %c0_66 = arith.constant 0 : index
    %c0_67 = arith.constant 0 : index
    %c0_68 = arith.constant 0 : index
    %142 = vector.load %arg14[%c0_66, %c0_67, %c0_68] : memref<1x1x32xf32, #tpu.memory_space<vmem>>, vector<1x1x32xf32>
    %143 = vector.shape_cast %142 : vector<1x1x32xf32> to vector<1x32xf32>
    %cst_69 = arith.constant dense<0.000000e+00> : vector<16xf32>
    %144 = vector.multi_reduction <add>, %139, %cst_69 [1] : vector<16x32xf32> to vector<16xf32>
    %145 = vector.shape_cast %144 : vector<16xf32> to vector<16x1xf32>
    %cst_70 = arith.constant 3.200000e+01 : f32
    %146 = vector.broadcast %cst_70 : f32 to vector<16x1xf32>
    %147 = arith.divf %145, %146 : vector<16x1xf32>
    %148 = vector.broadcast %147 : vector<16x1xf32> to vector<16x32xf32>
    %149 = arith.subf %139, %148 : vector<16x32xf32>
    %150 = arith.mulf %149, %149 : vector<16x32xf32>
    %cst_71 = arith.constant dense<0.000000e+00> : vector<16xf32>
    %151 = vector.multi_reduction <add>, %150, %cst_71 [1] : vector<16x32xf32> to vector<16xf32>
    %152 = vector.shape_cast %151 : vector<16xf32> to vector<16x1xf32>
    %cst_72 = arith.constant 3.200000e+01 : f32
    %153 = vector.broadcast %cst_72 : f32 to vector<16x1xf32>
    %154 = arith.divf %152, %153 : vector<16x1xf32>
    %cst_73 = arith.constant 9.99999974E-6 : f32
    %155 = vector.broadcast %cst_73 : f32 to vector<16x1xf32>
    %156 = arith.addf %154, %155 : vector<16x1xf32>
    %157 = math.rsqrt %156 : vector<16x1xf32>
    %158 = vector.broadcast %157 : vector<16x1xf32> to vector<16x32xf32>
    %159 = arith.mulf %149, %158 : vector<16x32xf32>
    %160 = vector.broadcast %141 : vector<1x32xf32> to vector<16x32xf32>
    %161 = arith.mulf %159, %160 : vector<16x32xf32>
    %162 = vector.broadcast %143 : vector<1x32xf32> to vector<16x32xf32>
    %163 = arith.addf %161, %162 : vector<16x32xf32>
    %164 = vector.shape_cast %163 : vector<16x32xf32> to vector<2x8x32xf32>
    %c0_74 = arith.constant 0 : index
    %c0_75 = arith.constant 0 : index
    %c0_76 = arith.constant 0 : index
    %165 = vector.load %arg15[%c0_74, %c0_75, %c0_76] : memref<2x8x32xf32, #tpu.memory_space<vmem>>, vector<2x8x32xf32>
    tpu.vector_store %arg15[%c0_74, %c0_75, %c0_76], %164 {strides = array<i32>} : memref<2x8x32xf32, #tpu.memory_space<vmem>>, vector<2x8x32xf32>,
    return
  }
  func.func @transform_0(%arg0: i32, %arg1: i32) -> (i32, i32, i32) {
    %c0_i32 = arith.constant 0 : i32
    %c0_i32_0 = arith.constant 0 : i32
    %c0_i32_1 = arith.constant 0 : i32
    return %arg0, %c0_i32, %c0_i32_0 : i32, i32, i32
  }
  func.func @transform_1(%arg0: i32, %arg1: i32) -> (i32, i32, i32) {
    %c0_i32 = arith.constant 0 : i32
    %c0_i32_0 = arith.constant 0 : i32
    %c0_i32_1 = arith.constant 0 : i32
    return %arg1, %c0_i32, %c0_i32_0 : i32, i32, i32
  }
  func.func @transform_2(%arg0: i32, %arg1: i32) -> (i32, i32, i32) {
    %c0_i32 = arith.constant 0 : i32
    %c0_i32_0 = arith.constant 0 : i32
    %c0_i32_1 = arith.constant 0 : i32
    return %arg1, %c0_i32, %c0_i32_0 : i32, i32, i32
  }
  func.func @transform_3(%arg0: i32, %arg1: i32) -> (i32, i32, i32) {
    %c0_i32 = arith.constant 0 : i32
    %c0_i32_0 = arith.constant 0 : i32
    %c0_i32_1 = arith.constant 0 : i32
    return %arg1, %c0_i32, %c0_i32_0 : i32, i32, i32
  }
  func.func @transform_4(%arg0: i32, %arg1: i32) -> (i32, i32, i32) {
    %c0_i32 = arith.constant 0 : i32
    %c0_i32_0 = arith.constant 0 : i32
    %c0_i32_1 = arith.constant 0 : i32
    return %arg1, %c0_i32, %c0_i32_0 : i32, i32, i32
  }
  func.func @transform_5(%arg0: i32, %arg1: i32) -> (i32, i32, i32) {
    %c0_i32 = arith.constant 0 : i32
    %c0_i32_0 = arith.constant 0 : i32
    %c0_i32_1 = arith.constant 0 : i32
    return %arg1, %c0_i32, %c0_i32_0 : i32, i32, i32
  }
  func.func @transform_6(%arg0: i32, %arg1: i32) -> (i32, i32, i32) {
    %c0_i32 = arith.constant 0 : i32
    %c0_i32_0 = arith.constant 0 : i32
    %c0_i32_1 = arith.constant 0 : i32
    return %arg1, %c0_i32, %c0_i32_0 : i32, i32, i32
  }
  func.func @transform_7(%arg0: i32, %arg1: i32) -> (i32, i32, i32) {
    %c0_i32 = arith.constant 0 : i32
    %c0_i32_0 = arith.constant 0 : i32
    %c0_i32_1 = arith.constant 0 : i32
    return %arg1, %c0_i32, %c0_i32_0 : i32, i32, i32
  }
  func.func @transform_8(%arg0: i32, %arg1: i32) -> (i32, i32, i32) {
    %c0_i32 = arith.constant 0 : i32
    %c0_i32_0 = arith.constant 0 : i32
    %c0_i32_1 = arith.constant 0 : i32
    return %arg1, %c0_i32, %c0_i32_0 : i32, i32, i32
  }
  func.func @transform_9(%arg0: i32, %arg1: i32) -> (i32, i32, i32) {
    %c0_i32 = arith.constant 0 : i32
    %c0_i32_0 = arith.constant 0 : i32
    %c0_i32_1 = arith.constant 0 : i32
    return %arg1, %c0_i32, %c0_i32_0 : i32, i32, i32
  }
  func.func @transform_10(%arg0: i32, %arg1: i32) -> (i32, i32, i32) {
    %c0_i32 = arith.constant 0 : i32
    %c0_i32_0 = arith.constant 0 : i32
    %c0_i32_1 = arith.constant 0 : i32
    return %arg1, %c0_i32, %c0_i32_0 : i32, i32, i32
  }
  func.func @transform_11(%arg0: i32, %arg1: i32) -> (i32, i32, i32) {
    %c0_i32 = arith.constant 0 : i32
    %c0_i32_0 = arith.constant 0 : i32
    %c0_i32_1 = arith.constant 0 : i32
    return %arg1, %c0_i32, %c0_i32_0 : i32, i32, i32
  }
  func.func @transform_12(%arg0: i32, %arg1: i32) -> (i32, i32, i32) {
    %c0_i32 = arith.constant 0 : i32
    %c0_i32_0 = arith.constant 0 : i32
    %c0_i32_1 = arith.constant 0 : i32
    return %arg1, %c0_i32, %c0_i32_0 : i32, i32, i32
  }
  func.func @transform_13(%arg0: i32, %arg1: i32) -> (i32, i32, i32) {
    %c0_i32 = arith.constant 0 : i32
    %c0_i32_0 = arith.constant 0 : i32
    %c0_i32_1 = arith.constant 0 : i32
    return %arg0, %c0_i32, %c0_i32_0 : i32, i32, i32
  }
}

</mosaic_0001>

<bundles_post_ra>
// kernel: tpu_custom_call.1
= control target key start
LH: loop header
LB: loop body
LE: loop exit
PB: predicated region body
PF: predicated region fallthrough
CT: control target
= control target key end

     0   :  { %s4661_s0 = inlined_call_operand.hbm [shape: f32[2,8,32], index: 0, kind: input, shape index: {}]   ;;  %s4662_s1 = inlined_call_operand.vmem [shape: bf16[2,32,96], index: 1, kind: input, shape index: {}]   ;;  %s4663_s2 = inlined_call_operand.vmem [shape: f32[2,1,96], index: 2, kind: input, shape index: {}]   ;;  %s4664_s3 = inlined_call_operand.vmem [shape: bf16[2,32,32], index: 3, kind: input, shape index: {}]   ;;  %s4665_s4 = inlined_call_operand.hbm [shape: f32[2,1,32], index: 4, kind: input, shape index: {}]   ;;  %s4666_s5 = inlined_call_operand.hbm [shape: f32[2,1,32], index: 5, kind: input, shape index: {}]   ;;  %s4667_s6 = inlined_call_operand.hbm [shape: f32[2,1,32], index: 6, kind: input, shape index: {}]   ;;  %s4668_s7 = inlined_call_operand.vmem [shape: bf16[2,32,64], index: 7, kind: input, shape index: {}]   ;;  %s4669_s8 = inlined_call_operand.hbm [shape: f32[2,1,64], index: 8, kind: input, shape index: {}]   ;;  %s4670_s9 = inlined_call_operand.vmem [shape: bf16[2,64,32], index: 9, kind: input, shape index: {}]   ;;  %s4671_s10 = inlined_call_operand.vmem [shape: f32[2,1,32], index: 10, kind: input, shape index: {}]   ;;  %s4672_s11 = inlined_call_operand.vmem [shape: f32[2,1,32], index: 11, kind: input, shape index: {}]   ;;  %s4673_s12 = inlined_call_operand.vmem [shape: f32[2,1,32], index: 12, kind: input, shape index: {}]   ;;  %s4674_s13 = inlined_call_operand.hbm [shape: f32[2,8,32], index: 13, kind: output, shape index: {}]  }
   0x1   :  { %4687 = sst [smem:[#allocation21_spill]] %s4661_s0 }
   0x2   :  { %4688 = sst [smem:[#allocation22_spill]] %s4662_s1 }
   0x3   :  { %4689 = sst [smem:[#allocation23_spill]] %s4664_s3 }
   0x4   :  { %4690 = sst [smem:[#allocation24_spill]] %s4665_s4 }
   0x5   :  { %4691 = sst [smem:[#allocation25_spill]] %s4667_s6 }
   0x6   :  { %4692 = sst [smem:[#allocation26_spill]] %s4668_s7 }
   0x7   :  { %4693 = sst [smem:[#allocation27_spill]] %s4670_s9 }
   0x8   :  { %4694 = sst [smem:[#allocation28_spill]] %s4671_s10 }
   0x9   :  { %4695 = sst [smem:[#allocation29_spill]] %s4672_s11 }
   0xa   :  { %4696 = sst [smem:[#allocation30_spill]] %s4673_s12 }
   0xb   :  { %4697 = sst [smem:[#allocation31_spill]] %s4674_s13 }
   0xc   :  { %18 = vsyncpa [#allocation3], 0 }
   0xd   :  { %19 = vsyncpa [#allocation6], 0 }
   0xe   :  { %21 = vsyncpa [#allocation6 + $0x1], 0 }
   0xf   :  { %22 = vsyncpa [#allocation9], 0 }
  0x10   :  { %24 = vsyncpa [#allocation9 + $0x1], 0 }
  0x11   :  { %25 = vsyncpa [#allocation4], 0  ;;  %s4012_s25 = smov 0   ;;  %s4014_s26 = smov 0  }
  0x12   :  { %s4016_s27 = smov 0   ;;  %s4018_s28 = smov 0  }
  0x13   :  { %s4020_s29 = smov 0   ;;  %s4022_s30 = smov 0  }
  0x14 LB: > { %4698 = sst [smem:[#allocation16_spill]] %s3900_s27  ;;  %s40_s14 = sadd.s32 1, %s3908_s29  ;;  %s3912_s30 = sphi %s4022_s30, %s31_s30   ;;  %s3908_s29 = sphi %s4020_s29, %s4740_s29   ;;  %s3904_s28 = sphi %s4018_s28, %s4739_s28   ;;  %s3900_s27 = sphi %s4016_s27, %s4738_s27   ;;  %s3896_s26 = sphi %s4014_s26, %s4742_s26   ;;  %s3892_s25 = sphi %s4012_s25, %s4741_s25  }
  0x15   : > { %4699 = sst [smem:[#allocation17_spill]] %s3908_s29  ;;  %s154_s15 = sadd.s32 1, %s3900_s27 }
  0x16   : > { %4700 = sst [smem:[#allocation18_spill]] %s3912_s30  ;;  %p41_p0 = scmp.ge.s32.totalorder %s40_s14, 2 }
  0x17   : > { %p161_p1 = scmp.ne.s32.totalorder %s3900_s27, %s3896_s26  ;;  %p162_p2 = scmp.eq.s32.totalorder %s3912_s30, 0 }
  0x18   : > { %s4744_s14 = smov (%p41_p0, %s40_s14), 0  ;;  %p3544_p4 = scmp.lt.s32.totalorder %s3912_s30, 2 }
  0x19   : > { %4701 = sst [smem:[#allocation19_spill]] %s4744_s14  ;;  %p163_p3 = por %p162_p2, %p161_p1 }
  0x1a   : > { %s151_s16 = ssub.s32 %s3908_s29, %s4744_s14  ;;  %s4054_s18 = sand.u32 1, %s3900_s27  }
  0x1b   : > { %p152_p5 = scmp.eq.s32.totalorder %s151_s16, 0  ;;  %s4057_s19 = sshll.u32 %s3908_s29, 4 }
  0x1c   : > { %s4703_s4 = sld [smem:[#allocation24_spill]]  ;;  %s466_s24 = scalar_lea.vmem [#allocation5], %s4054_s18 }
  0x1d   : > { %s4060_s20 = scalar_select %p152_p5, %s3900_s27, %s154_s15  }
  0x1e   : > { %s473_s17 = sshll.u32 %s466_s24, 4  ;;  %p4069_p6 = pnand %p3544_p4, %p163_p3  ;;  %s4073_s17 = int_to_ptr.vmem [resolvable:$true] %s473_s17 }
  0x1f   : > { %4702 = sst [smem:[#allocation20_spill]] %s4060_s20  ;;  %s4705_s15 = sand.u32 1, %s3912_s30  }
  0x20   : > { %s4704_s16 = scalar_select %p4069_p6, 1, 0 }
  0x21   : > { %s4077_s14 = scalar_lea.sflag [#allocation6], %s4705_s15  ;;  %p4083_p8 = pneg %p4069_p6 }
  0x22   : > { %s4066_s23 = scalar_lea.hbm %s4703_s4, %s4057_s19  ;;  %s3681_s20 = scalar_lea.hbm %s4703_s4, 32 }
  0x23   : > { %s3676_s29 = scalar_lea.hbm %s4066_s23, 16  ;;  %p3682_p11 = scmp.lt.u32.totalorder %s4066_s23, %s4703_s4 }
  0x24   : > { %p3677_p7 = scmp.ne.s32.totalorder %s4066_s23, %s3676_s29  ;;  %p3683_p12 = scmp.lt.u32.totalorder %s3681_s20, %s3676_s29 }
  0x25   : > { %s4706_s21 = scalar_select %p4083_p8, 1, 0 }
  0x26   : > { %p3679_p9 = pnand %p4083_p8, %p3677_p7  ;;  %p3684_p13 = por %p3683_p12, %p3682_p11 }
  0x27   : > { %p3685_p0 = scmp.lt.u32.totalorder %s3676_s29, %s4066_s23 }
  0x28   : > { %p3680_p10 = pneg %p3679_p9 }
  0x29   : > { %p3686_p1 = por %p3685_p0, %p3684_p13 }
  0x2b   : > { %p3687_p2 = pnand %p3686_p1, %p3680_p10 }
  0x2d   : > { %3690 = shalt.err (!%p3687_p2)
}
  0x2e   : > { %s3691_s15 = scalar_lea.vmem %s4073_s17, 16  ;;  %s3914_s22 = smov [#allocation5]  }
  0x2f   : > { %p3692_p3 = scmp.ne.s32.totalorder %s4073_s17, %s3691_s15  ;;  %s3696_s24 = sshll.u32 %s3914_s22, 4  ;;  %s3697_s24 = int_to_ptr.vmem [resolvable:$false] %s3696_s24 }
  0x30   : > { %s3698_s13 = scalar_lea.vmem %s3697_s24, 32  ;;  %p3699_p7 = scmp.lt.s32.totalorder %s4073_s17, %s3697_s24 }
  0x31   : > { %p3694_p4 = pnand %p3692_p3, %p4083_p8  ;;  %p3700_p9 = scmp.lt.s32.totalorder %s3698_s13, %s3691_s15 }
  0x33   : > { %p3695_p5 = pneg %p3694_p4  ;;  %p3701_p11 = por %p3700_p9, %p3699_p7 }
  0x35   : > { %p3702_p12 = pnand %p3701_p11, %p3695_p5 }
  0x37   : > { %3705 = shalt.err (!%p3702_p12)
}
  0x38   : > { %3533 = dma.hbm_to_vmem [thread:$0]  (!%p4069_p6), %s4066_s23, 16, %s4073_s17, %s4077_s14  }
  0x39   : > { %s4707_s6 = sld [smem:[#allocation25_spill]]  ;;  %s500_s15 = scalar_lea.vmem [#allocation8], %s4054_s18 }
  0x3a   : > { %s507_s22 = sshll.u32 %s500_s15, 4  ;;  %s4708_s24 = sand.u32 1, %s3912_s30   ;;  %s508_s22 = int_to_ptr.vmem [resolvable:$true] %s507_s22 }
  0x3b   : > { %s4116_s13 = scalar_lea.sflag [#allocation9], %s4708_s24 }
  0x3f   : > { %s4111_s20 = scalar_lea.hbm %s4707_s6, %s4057_s19  ;;  %s3711_s27 = scalar_lea.hbm %s4707_s6, 32 }
  0x40   : > { %s3706_s4 = scalar_lea.hbm %s4111_s20, 16  ;;  %p3712_p1 = scmp.lt.u32.totalorder %s4111_s20, %s4707_s6 }
  0x41   : > { %p3707_p10 = scmp.ne.s32.totalorder %s4111_s20, %s3706_s4  ;;  %p3713_p2 = scmp.lt.u32.totalorder %s3711_s27, %s3706_s4 }
  0x42   : > { %p3715_p4 = scmp.lt.u32.totalorder %s3706_s4, %s4111_s20 }
  0x43   : > { %p3709_p13 = pnand %p3707_p10, %p4083_p8  ;;  %p3714_p3 = por %p3713_p2, %p3712_p1 }
  0x45   : > { %p3710_p0 = pneg %p3709_p13  ;;  %p3716_p5 = por %p3715_p4, %p3714_p3 }
  0x47   : > { %p3717_p7 = pnand %p3716_p5, %p3710_p0 }
  0x49   : > { %3720 = shalt.err (!%p3717_p7)
}
  0x4a   : > { %s3721_s15 = scalar_lea.vmem %s508_s22, 16  ;;  %s3915_s24 = smov [#allocation8]  }
  0x4b   : > { %p3722_p9 = scmp.ne.s32.totalorder %s508_s22, %s3721_s15  ;;  %s3726_s11 = sshll.u32 %s3915_s24, 4  ;;  %s3727_s11 = int_to_ptr.vmem [resolvable:$false] %s3726_s11 }
  0x4c   : > { %s3728_s17 = scalar_lea.vmem %s3727_s11, 32  ;;  %p3729_p10 = scmp.lt.s32.totalorder %s508_s22, %s3727_s11 }
  0x4d   : > { %p3724_p11 = pnand %p3722_p9, %p4083_p8  ;;  %p3730_p13 = scmp.lt.s32.totalorder %s3728_s17, %s3721_s15 }
  0x4f   : > { %p3725_p12 = pneg %p3724_p11  ;;  %p3731_p6 = por %p3730_p13, %p3729_p10 }
  0x51   : > { %p3732_p1 = pnand %p3731_p6, %p3725_p12 }
  0x53   : > { %3735 = shalt.err (!%p3732_p1)
}
  0x54   : > { %p4709_p2 = scmp.ne.s32.totalorder %s4704_s16, 0  ;;  %s4137_s4 = sadd.s32 4294967295, %s3912_s30  }
  0x55   : > { %p167_p0 = scmp.ne.s32.totalorder %s3896_s26, %s3892_s25  ;;  %p4682_p6 = scmp.eq.s32.totalorder %s4137_s4, 0 }
  0x56   : > { %3539 = dma.hbm_to_vmem [thread:$0]  (!%p4709_p2), %s4111_s20, 16, %s508_s22, %s4116_s13  }
  0x57   : > { %p3218_p3 = scmp.ge.s32.totalorder %s3912_s30, 1  ;;  %p412_p4 = scmp.lt.s32.totalorder %s3912_s30, 3 }
  0x58   : > { %p4146_p5 = por %p4682_p6, %p167_p0  ;;  %s3916_s20 = smov [#allocation2]  }
  0x59   : > { %p4150_p7 = pnand %p3218_p3, %p412_p4  ;;  %s427_s22 = sshll.u32 %s3916_s20, 4  ;;  %s428_s22 = int_to_ptr.vmem [resolvable:$true] %s427_s22 }
  0x5a   : > { %s4710_s11 = scalar_select %p4146_p5, 1, 0 }
  0x5b   : > { %s4711_s12 = scalar_select %p4150_p7, 1, 0 }
  0x5c   : > { %p3526_p9 = pneg %p4150_p7  ;;  %s4166_s29 = scalar_lea.hbm %s4666_s5, %s4057_s19 }
  0x5d   : > { %s483_s15 = scalar_lea.vmem [#allocation7], %s4054_s18  ;;  %s4713_s0 = sld [smem:[#allocation21_spill]] }
  0x5e   : > { %p4158_p11 = pnand %p3526_p9, %p4682_p6  ;;  %s490_s24 = sshll.u32 %s483_s15, 4  ;;  %s4169_s24 = int_to_ptr.vmem [resolvable:$true] %s490_s24 }
  0x60   : > { %p3738_p10 = pneg %p4158_p11 }
  0x63   : > { %s3736_s6 = scalar_lea.hbm %s4713_s0, 256 }
  0x64   : > { %p3737_p12 = scmp.ne.s32.totalorder %s4713_s0, %s3736_s6  ;;  %p3743_p0 = scmp.lt.u32.totalorder %s3736_s6, %s4713_s0 }
  0x66   : > { %p3739_p13 = pnand %p3738_p10, %p3737_p12 }
  0x68   : > { %p3740_p1 = pneg %p3739_p13 }
  0x6a   : > { %p3745_p3 = pnand %p3743_p0, %p3740_p1 }
  0x6c   : > { %3748 = shalt.err (!%p3745_p3)
}
  0x6d   : > { %s3749_s15 = scalar_lea.vmem %s428_s22, 256  ;;  %p3757_p5 = scmp.lt.s32.totalorder %s428_s22, %s428_s22 }
  0x6e   : > { %p3750_p4 = scmp.ne.s32.totalorder %s428_s22, %s3749_s15  ;;  %p3758_p7 = scmp.lt.s32.totalorder %s3749_s15, %s3749_s15 }
  0x70   : > { %p3752_p9 = pnand %p3750_p4, %p3738_p10  ;;  %p3759_p2 = por %p3758_p7, %p3757_p5 }
  0x72   : > { %p3753_p6 = pneg %p3752_p9 }
  0x74   : > { %p3760_p8 = pnand %p3759_p2, %p3753_p6 }
  0x76   : > { %3763 = shalt.err (!%p3760_p8)
}
  0x77   : > { %s3917_s10 = smov 128   ;;  %s3918_s30 = smov 8  }
  0x78   : > { %3529 = dma.hbm_to_vmem [thread:$0]  (!%p4158_p11), %s4713_s0, 256, %s428_s22, [#allocation3], %s3917_s10, %s3917_s10, %s3918_s30  }
  0x79   : > { %s3764_s20 = scalar_lea.hbm %s4166_s29, 16  ;;  %p4714_p10 = scmp.ne.s32.totalorder %s4706_s21, 0 }
  0x7a   : > { %p3765_p12 = scmp.ne.s32.totalorder %s4166_s29, %s3764_s20  ;;  %s3769_s15 = scalar_lea.hbm %s4666_s5, 32 }
  0x7b   : > { %p3770_p8 = scmp.lt.u32.totalorder %s4166_s29, %s4666_s5  ;;  %p3771_p2 = scmp.lt.u32.totalorder %s3769_s15, %s3764_s20 }
  0x7c   : > { %p3767_p13 = pnand %p3765_p12, %p4714_p10  ;;  %p3773_p7 = scmp.lt.u32.totalorder %s3764_s20, %s4166_s29 }
  0x7d   : > { %p3772_p6 = por %p3771_p2, %p3770_p8 }
  0x7e   : > { %p3768_p5 = pneg %p3767_p13 }
  0x7f   : > { %p3774_p1 = por %p3773_p7, %p3772_p6 }
  0x81   : > { %p3775_p0 = pnand %p3774_p1, %p3768_p5 }
  0x83   : > { %3778 = shalt.err (!%p3775_p0)
}
  0x84   : > { %s3779_s22 = scalar_lea.vmem %s4169_s24, 16  ;;  %s3919_s25 = smov [#allocation7]  }
  0x85   : > { %p3780_p11 = scmp.ne.s32.totalorder %s4169_s24, %s3779_s22  ;;  %s3784_s10 = sshll.u32 %s3919_s25, 4  ;;  %s3785_s10 = int_to_ptr.vmem [resolvable:$false] %s3784_s10 }
  0x86   : > { %s3786_s7 = scalar_lea.vmem %s3785_s10, 32  ;;  %p3787_p9 = scmp.lt.s32.totalorder %s4169_s24, %s3785_s10 }
  0x87   : > { %p3782_p3 = pnand %p3780_p11, %p4714_p10  ;;  %p3788_p12 = scmp.lt.s32.totalorder %s3786_s7, %s3779_s22 }
  0x89   : > { %p3783_p4 = pneg %p3782_p3  ;;  %p3789_p13 = por %p3788_p12, %p3787_p9 }
  0x8b   : > { %p3790_p8 = pnand %p3789_p13, %p3783_p4 }
  0x8d   : > { %3793 = shalt.err (!%p3790_p8)
}
  0x8e   : > { %p4715_p5 = scmp.ne.s32.totalorder %s4704_s16, 0  ;;  %s4213_s6 = scalar_lea.hbm %s4669_s8, %s4057_s19 }
  0x8f   : > { %s525_s17 = scalar_lea.vmem [#allocation10], %s4054_s18  ;;  %s3794_s23 = scalar_lea.hbm %s4213_s6, 16 }
  0x90   : > { %3536 = dma.hbm_to_vmem [thread:$0]  (!%p4715_p5), %s4166_s29, 16, %s4169_s24, %s4077_s14  }
  0x91   : > { %s532_s20 = sshll.u32 %s525_s17, 4  ;;  %p3795_p2 = scmp.ne.s32.totalorder %s4213_s6, %s3794_s23  ;;  %s533_s20 = int_to_ptr.vmem [resolvable:$true] %s532_s20 }
  0x92   : > { %s3799_s14 = scalar_lea.hbm %s4669_s8, 32  ;;  %p3800_p1 = scmp.lt.u32.totalorder %s4213_s6, %s4669_s8 }
  0x93   : > { %p3797_p6 = pnand %p3795_p2, %p4714_p10  ;;  %p3801_p0 = scmp.lt.u32.totalorder %s3799_s14, %s3794_s23 }
  0x94   : > { %p3803_p3 = scmp.lt.u32.totalorder %s3794_s23, %s4213_s6 }
  0x95   : > { %p3798_p7 = pneg %p3797_p6  ;;  %p3802_p11 = por %p3801_p0, %p3800_p1 }
  0x97   : > { %p3804_p4 = por %p3803_p3, %p3802_p11 }
  0x99   : > { %p3805_p9 = pnand %p3804_p4, %p3798_p7 }
  0x9b   : > { %3808 = shalt.err (!%p3805_p9)
}
  0x9c   : > { %s3809_s18 = scalar_lea.vmem %s533_s20, 16  ;;  %s3920_s19 = smov [#allocation10]  }
  0x9d   : > { %p3810_p12 = scmp.ne.s32.totalorder %s533_s20, %s3809_s18  ;;  %s3814_s22 = sshll.u32 %s3920_s19, 4  ;;  %s3815_s22 = int_to_ptr.vmem [resolvable:$false] %s3814_s22 }
  0x9e   : > { %s3816_s25 = scalar_lea.vmem %s3815_s22, 32  ;;  %p3817_p2 = scmp.lt.s32.totalorder %s533_s20, %s3815_s22 }
  0x9f   : > { %p3812_p13 = pnand %p3810_p12, %p4714_p10  ;;  %p3818_p6 = scmp.lt.s32.totalorder %s3816_s25, %s3809_s18 }
  0xa1   : > { %p3813_p8 = pneg %p3812_p13  ;;  %p3819_p5 = por %p3818_p6, %p3817_p2 }
  0xa3   : > { %p3820_p0 = pnand %p3819_p5, %p3813_p8 }
  0xa5   : > { %3823 = shalt.err (!%p3820_p0)
}
  0xa6   : > { %p4716_p1 = scmp.ne.s32.totalorder %s4704_s16, 0  ;;  %p4717_p7 = scmp.ne.s32.totalorder %s4711_s12, 0 }
  0xa7   : > { %p4718_p10 = scmp.eq.s32.totalorder (!%p4717_p7), %s4137_s4, 0 }
  0xa8   : > { %3542 = dma.hbm_to_vmem [thread:$0]  (!%p4716_p1), %s4213_s6, 16, %s533_s20, %s4116_s13  }
  0xa9   : > { %567 = sbr.rel (%p4717_p7) target bundleno = 2750 (0xabe), region = 72 }
  0xb0   : > { %3875 = dma.done.wait (%p4718_p10), [#allocation3], 256   ;;  %p4719_p11 = pmov %p4718_p10 }
  0xb1   : > { %s573_s21 = sand.u32 1, %s4137_s4   ;;  %s4242_s10 = sand.u32 1, %s3896_s26  }
  0xb2   : > { %3877 = vsyncadd (%p4719_p11), [#allocation3], 4294967040  ;;  %s574_s16 = scalar_lea.sflag [#allocation6], %s573_s21  ;;  %p4720_p5 = scmp.ne.s32.totalorder %s4710_s11, 0 }
  0xb4   : > { %3879 = dma.done.wait (%p4720_p5), %s574_s16, 32  }
  0xb5   : > { %3881 = vsyncadd (%p4720_p5), %s574_s16, 4294967264  ;;  %s590_s12 = scalar_lea.sflag [#allocation9], %s573_s21 }
  0xb6   : > { %3883 = dma.done.wait (%p4720_p5), %s590_s12, 32  }
  0xb7   : > { %3885 = vsyncadd (%p4720_p5), %s590_s12, 4294967264  ;;  %p682_p3 = scmp.lt.s32.totalorder %s3904_s28, 1  ;;  %s4721_s1 = sld [smem:[#allocation22_spill]] }
  0xb8   : > { %s4722_s3 = sld [smem:[#allocation23_spill]]  ;;  %s4723_s22 = sld [smem:[#allocation26_spill]] }
  0xb9   : > { %s4257_s30 = scalar_select %p682_p3, %s3904_s28, 1 }
  0xba   : > { %s4724_s9 = sld [smem:[#allocation27_spill]]  ;;  %s4725_s27 = sld [smem:[#allocation28_spill]] }
  0xbb   : > { %s3328_s6 = sshll.u32 %s4257_s30, 4  ;;  %s3331_s21 = sshll.u32 %s4257_s30, 5 }
  0xbc   : > { %s4726_s14 = sld [smem:[#allocation29_spill]]  ;;  %p3235_p4 = scmp.ne.s32.totalorder %s3904_s28, 0 }
  0xbd   : > { %s686_s15 = scalar_lea.vmem %s4721_s1, %s3328_s6  ;;  %v720_v0 = vld [vmem:[#allocation2] sm:$0xff] (!%p3235_p4)  ;;  %vm722_vm0 = vcmask (!%p3235_p4), 261120   ;;  %v721_v1 = vld [vmem:[#allocation2 + $0x8] sm:$0xff] (!%p3235_p4) }
  0xbe   : > { %s4270_s24 = scalar_lea.vmem %s4722_s3, %s3328_s6  ;;  %s4275_s25 = scalar_lea.vmem %s4723_s22, %s3328_s6  ;;  %723 = vst.msk [vmem:[#allocation11] sm:$0xff] (!%p3235_p4), %vm722_vm0, %v720_v0  ;;  %724 = vst.msk [vmem:[#allocation11 + $0x8] sm:$0xff] (!%p3235_p4), %vm722_vm0, %v721_v1 }
  0xbf   : > { %s4727_s3 = sld [smem:[#allocation30_spill]]  ;;  %s600_s6 = scalar_lea.vmem [#allocation10], %s4242_s10 }
  0xc0   : > { %s4281_s17 = scalar_lea.vmem %s4724_s9, %s3331_s21  ;;  %s707_s11 = scalar_lea.vmem %s4725_s27, %s4257_s30 }
  0xc1   : > { %719 = sbr.rel (%p3235_p4) target bundleno = 200 (0xc8), region = 96 }
  0xc2   : > { %s710_s29 = scalar_lea.vmem %s4726_s14, %s4257_s30 }
  0xc5   : > { %s713_s18 = scalar_lea.vmem %s4727_s3, %s4257_s30 }
  0xc8 PF: > { %v3620_v2 = vld [vmem:[%s686_s15] sm:$0xff]   ;;  %v3921_v3 = vmov 0.0   ;;  %v3621_v4 = vld [vmem:[%s686_s15 + $0x8] sm:$0xff]   ;;  %vm3922_vm1 = vmmov 0   ;;  %v725_v5 = vld [vmem:[#allocation11] sm:$0xff]  ;;  %vm751_vm2 = vcmask 261120   ;;  %s4728_s3 = scalar_lea.vmem %s4663_s2, %s4257_s30  ;;  %v879_v21 = vlaneseq }
  0xc9   : > { %3378 = vmatprep.subr.bf16.mxu0 %v3921_v3  ;;  %3386 = vmatprep.subr.bf16.mxu1 %v3921_v3  ;;  %v726_v6 = vld [vmem:[#allocation11 + $0x8] sm:$0xff]  ;;  %s3923_s28 = smov 104   ;;  %s3924_s7 = smov 120   ;;  %v3932_v19 = vmov 1983009808   ;;  %vm1462_vm3 = vcmask 64512  }
  0xca   : > { %3379 = vmatpush3.bf16.msra.mxu0 %v3620_v2  ;;  %3382 = vmatprep.mubr.msk.bf16.mxu0 %vm3922_vm1, %v3921_v3  ;;  %v727_v7 = vpack.c.bf16 %v726_v6, %v725_v5  ;;  %v3236_v8 = vld [vmem:[%s4728_s3] ss:$0 sm:$0xff]  ;;  %s3925_s13 = smov 96   ;;  %s3926_s9 = smov 112   ;;  %v877_v20 = vunpack.c.l.s4 %v3932_v19  ;;  %v3933_v23 = vmov 1934713408  }
  0xcb   : > { %3380 = vmatprep.subr.bf16.mxu0 %v3921_v3  ;;  %3388 = vmatprep.mubr.msk.bf16.mxu1 %vm3922_vm1, %v3921_v3  ;;  %s3927_s23 = smov 80   ;;  %s3928_s15 = smov 88   ;;  %v939_v24 = vunpack.c.l.s4 %v3933_v23  ;;  %v880_v26 = vshrl.u32 %v879_v21, 7  ;;  %vm1914_vm4 = vcmask 1043456   ;;  %vm2609_vm5 = vcmask 130048  }
  0xcc   : > { %s3929_s19 = smov 56   ;;  %s3930_s22 = smov 72   ;;  %v878_v25 = vunpack.c.0.s8 %v877_v20  ;;  %vm2612_vm6 = vcmask 195584   ;;  %vm2902_vm7 = vcmask 523264  }
  0xcd   : > { %s3931_s21 = smov 64   ;;  %v940_v34 = vunpack.c.0.s8 %v939_v24  ;;  %s3934_s16 = smov 48  }
  0xce   : > { %3381 = vmatpush3.bf16.msra.mxu0 %v3621_v4  ;;  %v4326_v37 = vsub.s32 %v878_v25, %v880_v26  ;;  %s3935_s12 = smov 40   ;;  %s3938_s20 = smov 16  }
  0xcf   : > { %3392 = vmatprep.subr.bf16.mxu0 %v3921_v3  ;;  %v4328_v48 = vsub.s32 %v940_v34, %v880_v26  ;;  %s3939_s27 = smov 24   ;;  %s4729_s14 = scalar_lea.vmem [#allocation5], %s4242_s10 }
  0xd0   : > { %s4730_s0 = scalar_lea.vmem [#allocation7], %s4242_s10  ;;  %p3546_p9 = scmp.eq.s32.totalorder %s4137_s4, 1 }
  0xd1   : > { %3383 = vmatmul.mubr.msk.bf16.vlgmr.msra.gmra.mrb[0].mxu0 %vm751_vm2, %v727_v7 }
  0xd2   : > { %3394 = vmatprep.mubr.msk.bf16.mxu0 %vm3922_vm1, %v3921_v3 }
 0x1a4   : > { %v789_v9 = vpop.f32.mrb[0].mxu0 }
 0x1a5   : > { %v3384_v10 = vpop.f32.mrb[1].mxu0  ;;  %v790_v12 = vadd.f32 %v3236_v8, %v789_v9 }
 0x1a6   : > { %v792_v11 = vpop.f32.mrb[2].mxu0 }
 0x1a7   : > { %v793_v13 = vadd.f32 %v3236_v8, %v792_v11  ;;  %v3385_v14 = vpop.f32.mrb[3].mxu0 }
 0x1a9   : > { %v4313_v15 = vpack.c.bf16 %v793_v13, %v790_v12 }
 0x1ab   : > { %802 = vrot.lane.b32.xlu1 %v4313_v15, %s3923_s28  ;;  %798 = vrot.lane.b32.xlu0 %v4313_v15, %s3924_s7  ;;  %v824_v35 = vshrl.u32 %v4313_v15, 16 }
 0x1af   : > { %804 = vrot.lane.b32.xlu1 %v4313_v15, %s3925_s13  ;;  %800 = vrot.lane.b32.xlu0 %v4313_v15, %s3926_s9  ;;  %s3940_s9 = smov [#allocation11]  }
 0x1b3   : > { %808 = vrot.lane.b32.xlu1 %v4313_v15, %s3927_s23  ;;  %806 = vrot.lane.b32.xlu0 %v4313_v15, %s3928_s15  ;;  %s3004_s23 = sshll.u32 %s3940_s9, 4  ;;  %s3005_s23 = int_to_ptr.vmem [resolvable:$true] %s3004_s23 }
 0x1b4   : > { %p3831_p2 = scmp.lt.s32.totalorder %s3005_s23, %s3005_s23 }
 0x1b7   : > { %814 = vrot.lane.b32.xlu1 %v4313_v15, %s3929_s19  ;;  %810 = vrot.lane.b32.xlu0 %v4313_v15, %s3930_s22 }
 0x1bb   : > { %812 = vrot.lane.b32.xlu0 %v4313_v15, %s3931_s21 }
 0x21d   : > { %v803_v16 = vpop.permute.xlu1 %802  ;;  %v799_v17 = vpop.permute.xlu0 %798 }
 0x21e   : > { %v822_v30 = vpack.i.b16 %v799_v17, %v4313_v15  ;;  %v825_v31 = vshrl.u32 %v799_v17, 16  ;;  %v833_v39 = vshrl.u32 %v803_v16, 16 }
 0x220   : > { %v826_v47 = vpack.i.b16 %v825_v31, %v824_v35 }
 0x221   : > { %v801_v18 = vpop.permute.xlu0 %800  ;;  %v805_v22 = vpop.permute.xlu1 %804 }
 0x222   : > { %v840_v32 = vshrl.u32 %v805_v22, 16  ;;  %v832_v36 = vshrl.u32 %v801_v18, 16  ;;  %v830_v43 = vpack.i.b16 %v803_v16, %v801_v18 }
 0x224   : > { %v834_v49 = vpack.i.b16 %v833_v39, %v832_v36 }
 0x225   : > { %v807_v27 = vpop.permute.xlu0 %806  ;;  %v809_v33 = vpop.permute.xlu1 %808 }
 0x226   : > { %v838_v28 = vpack.i.b16 %v807_v27, %v805_v22  ;;  %v841_v29 = vshrl.u32 %v807_v27, 16  ;;  %v848_v44 = vshrl.u32 %v809_v33, 16 }
 0x228   : > { %v842_v40 = vpack.i.b16 %v841_v29, %v840_v32  ;;  %v874_v41 = vcombine.low %v822_v30, %v838_v28  ;;  %v875_v42 = vcombine.high %v822_v30, %v838_v28 }
 0x229   : > { %v811_v38 = vpop.permute.xlu0 %810 }
 0x22a   : > { %v846_v45 = vpack.i.b16 %v811_v38, %v809_v33  ;;  %v849_v46 = vshrl.u32 %v811_v38, 16  ;;  %v882_v53 = vrot.slane %v874_v41, %v4326_v37  ;;  %v889_v54 = vrot.slane %v875_v42, %v4326_v37 }
 0x22b   : > { %v1008_v55 = vcombine.low %v826_v47, %v842_v40  ;;  %v1009_v56 = vcombine.high %v826_v47, %v842_v40 }
 0x22c   : > { %v850_v50 = vpack.i.b16 %v849_v46, %v848_v44  ;;  %v890_v51 = vcombine.low %v830_v43, %v846_v45  ;;  %v891_v52 = vcombine.high %v830_v43, %v846_v45 }
 0x22d   : > { %v1016_v1 = vrot.slane %v1008_v55, %v4326_v37  ;;  %v1023_v2 = vrot.slane %v1009_v56, %v4326_v37 }
 0x22e   : > { %v898_v57 = vrot.slane %v890_v51, %v4326_v37  ;;  %v905_v58 = vrot.slane %v891_v52, %v4326_v37  ;;  %v1024_v59 = vcombine.low %v834_v49, %v850_v50  ;;  %v1025_v60 = vcombine.high %v834_v49, %v850_v50 }
 0x230   : > { %v936_v61 = vcombine.low %v882_v53, %v898_v57  ;;  %v937_v62 = vcombine.high %v882_v53, %v898_v57  ;;  %v952_v63 = vcombine.low %v889_v54, %v905_v58  ;;  %v953_v0 = vcombine.high %v889_v54, %v905_v58 }
 0x231   : > { %v1032_v4 = vrot.slane %v1024_v59, %v4326_v37  ;;  %v1039_v5 = vrot.slane %v1025_v60, %v4326_v37 }
 0x232   : > { %v944_v6 = vrot.slane %v936_v61, %v4328_v48  ;;  %v951_v7 = vrot.slane %v937_v62, %v4328_v48  ;;  %v960_v8 = vrot.slane %v952_v63, %v4328_v48  ;;  %v967_v9 = vrot.slane %v953_v0, %v4328_v48 }
 0x233   : > { %v1070_v10 = vcombine.low %v1016_v1, %v1032_v4  ;;  %v1071_v11 = vcombine.high %v1016_v1, %v1032_v4  ;;  %v1086_v12 = vcombine.low %v1023_v2, %v1039_v5  ;;  %v1087_v13 = vcombine.high %v1023_v2, %v1039_v5 }
 0x234   : > { %v3240_v14 = vcombine.low %v944_v6, %v951_v7  ;;  %v3242_v16 = vcombine.high %v944_v6, %v951_v7  ;;  %v3244_v17 = vcombine.low %v960_v8, %v967_v9  ;;  %v3246_v18 = vcombine.high %v960_v8, %v967_v9 }
 0x235   : > { %v1078_v19 = vrot.slane %v1070_v10, %v4328_v48  ;;  %v1085_v20 = vrot.slane %v1071_v11, %v4328_v48  ;;  %v1094_v21 = vrot.slane %v1086_v12, %v4328_v48  ;;  %v1101_v22 = vrot.slane %v1087_v13, %v4328_v48 }
 0x236   : > { %v1150_v23 = vrot.slane %v3240_v14, %v4326_v37  ;;  %v1166_v24 = vrot.slane %v3242_v16, %v4326_v37  ;;  %v1182_v29 = vrot.slane %v3244_v17, %v4326_v37  ;;  %v1198_v30 = vrot.slane %v3246_v18, %v4326_v37 }
 0x237   : > { %v3248_v25 = vcombine.low %v1078_v19, %v1085_v20  ;;  %v3250_v26 = vcombine.high %v1078_v19, %v1085_v20  ;;  %v3252_v27 = vcombine.low %v1094_v21, %v1101_v22  ;;  %v3254_v28 = vcombine.high %v1094_v21, %v1101_v22 }
 0x238   : > { %v1207_v31 = vcombine.high %v1150_v23, %v1166_v24  ;;  %v1231_v38 = vcombine.high %v1182_v29, %v1198_v30  ;;  %v1206_v44 = vcombine.low %v1150_v23, %v1166_v24  ;;  %v1230_v45 = vcombine.low %v1182_v29, %v1198_v30 }
 0x239   : > { %v1268_v32 = vrot.slane %v3248_v25, %v4326_v37  ;;  %v1284_v33 = vrot.slane %v3250_v26, %v4326_v37  ;;  %v1300_v34 = vrot.slane %v3252_v27, %v4326_v37  ;;  %v1316_v35 = vrot.slane %v3254_v28, %v4326_v37 }
 0x23a   : > { %v1221_v36 = vrot.slane %v1207_v31, %v4328_v48  ;;  %v1245_v43 = vrot.slane %v1231_v38, %v4328_v48  ;;  %v1214_v55 = vrot.slane %v1206_v44, %v4328_v48  ;;  %v1238_v56 = vrot.slane %v1230_v45, %v4328_v48 }
 0x23b   : > { %v1324_v39 = vcombine.low %v1268_v32, %v1284_v33  ;;  %v1325_v40 = vcombine.high %v1268_v32, %v1284_v33  ;;  %v1348_v41 = vcombine.low %v1300_v34, %v1316_v35  ;;  %v1349_v42 = vcombine.high %v1300_v34, %v1316_v35 }
 0x23c   : > { %v1256_v49 = vcombine.low %v1221_v36, %v1245_v43  ;;  %v1254_v63 = vcombine.low %v1214_v55, %v1238_v56  ;;  %v1257_v9 = vcombine.high %v1221_v36, %v1245_v43  ;;  %v1255_v23 = vcombine.high %v1214_v55, %v1238_v56 }
 0x23d   : > { %v1339_v46 = vrot.slane %v1325_v40, %v4328_v48  ;;  %v1363_v47 = vrot.slane %v1349_v42, %v4328_v48  ;;  %v1332_v51 = vrot.slane %v1324_v39, %v4328_v48  ;;  %v1356_v52 = vrot.slane %v1348_v41, %v4328_v48 }
 0x23e   : > { %v1393_v57 = vshrl.u32 %v1256_v49, 16  ;;  %v1381_v10 = vshrl.u32 %v1254_v63, 16  ;;  %v1399_v22 = vshrl.u32 %v1257_v9, 16  ;;  %v1387_v35 = vshrl.u32 %v1255_v23, 16 }
 0x23f   : > { %v1374_v50 = vcombine.low %v1339_v46, %v1363_v47  ;;  %v1372_v60 = vcombine.low %v1332_v51, %v1356_v52  ;;  %v1375_v5 = vcombine.high %v1339_v46, %v1363_v47  ;;  %v1373_v19 = vcombine.high %v1332_v51, %v1356_v52 }
 0x241   : > { %v1392_v53 = vpack.i.b16 %v1374_v50, %v1256_v49  ;;  %v1394_v54 = vshrl.u32 %v1374_v50, 16  ;;  %v1380_v1 = vpack.i.b16 %v1372_v60, %v1254_v63  ;;  %v1382_v6 = vshrl.u32 %v1372_v60, 16 }
 0x242   : > { %v1398_v13 = vpack.i.b16 %v1375_v5, %v1257_v9  ;;  %v1400_v18 = vshrl.u32 %v1375_v5, 16  ;;  %v1386_v27 = vpack.i.b16 %v1373_v19, %v1255_v23  ;;  %v1388_v32 = vshrl.u32 %v1373_v19, 16  ;;  %v813_v19 = vpop.permute.xlu0 %812 }
 0x243   : > { %v3264_v58 = vcombine.low %v1392_v53, %v1392_v53  ;;  %v3265_v59 = vcombine.high %v1392_v53, %v1392_v53  ;;  %v1395_v0 = vpack.i.b16 %v1394_v54, %v1393_v57  ;;  %v3256_v7 = vcombine.low %v1380_v1, %v1380_v1 }
 0x244   : > { %v3257_v8 = vcombine.high %v1380_v1, %v1380_v1  ;;  %v1383_v14 = vpack.i.b16 %v1382_v6, %v1381_v10  ;;  %v3268_v16 = vcombine.low %v1398_v13, %v1398_v13  ;;  %v3269_v17 = vcombine.high %v1398_v13, %v1398_v13 }
 0x245   : > { %v1467_v61 = vsel %vm1462_vm3, %v3264_v58, 0  ;;  %v1513_v62 = vsel %vm1462_vm3, %v3265_v59, 0  ;;  %v3266_v2 = vcombine.low %v1395_v0, %v1395_v0  ;;  %v3267_v4 = vcombine.high %v1395_v0, %v1395_v0 }
 0x246   : > { %3387 = vmatpush3.bf16.xpose.msra.mxu1 %v1467_v61  ;;  %3393 = vmatpush3.bf16.xpose.msra.mxu0 %v1513_v62  ;;  %v3258_v20 = vcombine.low %v1383_v14, %v1383_v14  ;;  %v3259_v21 = vcombine.high %v1383_v14, %v1383_v14  ;;  %v1651_v24 = vsel %vm1462_vm3, %v3268_v16, 0  ;;  %v1697_v25 = vsel %vm1462_vm3, %v3269_v17, 0 }
 0x247   : > { %3398 = vmatprep.subr.bf16.mxu1 %v3921_v3  ;;  %3404 = vmatprep.subr.bf16.mxu0 %v3921_v3  ;;  %v1559_v11 = vsel %vm1462_vm3, %v3266_v2, 0  ;;  %v1605_v12 = vsel %vm1462_vm3, %v3267_v4, 0  ;;  %v1401_v26 = vpack.i.b16 %v1400_v18, %v1399_v22  ;;  %v3260_v30 = vcombine.low %v1386_v27, %v1386_v27  ;;  %v815_v18 = vpop.permute.xlu1 %814 }
 0x248   : > { %v3261_v31 = vcombine.high %v1386_v27, %v1386_v27  ;;  %v1389_v36 = vpack.i.b16 %v1388_v32, %v1387_v35  ;;  %v854_v22 = vpack.i.b16 %v815_v18, %v813_v19  ;;  %v856_v23 = vshrl.u32 %v813_v19, 16 }
 0x249   : > { %v3270_v28 = vcombine.low %v1401_v26, %v1401_v26  ;;  %v3271_v29 = vcombine.high %v1401_v26, %v1401_v26 }
 0x24a   : > { %v3262_v38 = vcombine.low %v1389_v36, %v1389_v36  ;;  %v3263_v39 = vcombine.high %v1389_v36, %v1389_v36 }
 0x24b   : > { %v1743_v33 = vsel %vm1462_vm3, %v3270_v28, 0  ;;  %v1789_v34 = vsel %vm1462_vm3, %v3271_v29, 0  ;;  %v857_v28 = vshrl.u32 %v815_v18, 16 }
 0x24d   : > { %3389 = vmatmul.mubr.msk.bf16.vlgmr.msra.gmra.mrb[0].mxu1 %vm1462_vm3, %v3256_v7  ;;  %3395 = vmatmul.mubr.msk.bf16.vlgmr.msra.gmra.mrb[4].mxu0 %vm1462_vm3, %v3257_v8 }
 0x24e   : > { %3399 = vmatpush3.bf16.xpose.msra.mxu1 %v1559_v11  ;;  %3405 = vmatpush3.bf16.xpose.msra.mxu0 %v1605_v12 }
 0x24f   : > { %3400 = vmatprep.mubr.msk.bf16.mxu1 %vm3922_vm1, %v3921_v3  ;;  %3406 = vmatprep.mubr.msk.bf16.mxu0 %vm3922_vm1, %v3921_v3 }
 0x250   : > { %3410 = vmatprep.subr.bf16.mxu1 %v3921_v3  ;;  %3416 = vmatprep.subr.bf16.mxu0 %v3921_v3 }
 0x255   : > { %3401 = vmatmul.mubr.msk.bf16.vlgmr.msra.gmra.mrb[4].mxu1 %vm1462_vm3, %v3258_v20  ;;  %3407 = vmatmul.mubr.msk.bf16.vlgmr.msra.gmra.mrb[8].mxu0 %vm1462_vm3, %v3259_v21  ;;  %v3936_v20 = vmov 0  }
 0x256   : > { %3411 = vmatpush3.bf16.xpose.msra.mxu1 %v1651_v24  ;;  %3417 = vmatpush3.bf16.xpose.msra.mxu0 %v1697_v25  ;;  %v869_v21 = vpack.i.b16 %v3936_v20, %v3936_v20 }
 0x257   : > { %3412 = vmatprep.mubr.msk.bf16.mxu1 %vm3922_vm1, %v3921_v3  ;;  %3418 = vmatprep.mubr.msk.bf16.mxu0 %vm3922_vm1, %v3921_v3 }
 0x258   : > { %3422 = vmatprep.subr.bf16.mxu1 %v3921_v3  ;;  %3428 = vmatprep.subr.bf16.mxu0 %v3921_v3  ;;  %v906_v32 = vcombine.high %v854_v22, %v869_v21 }
 0x25d   : > { %3413 = vmatmul.mubr.msk.bf16.vlgmr.msra.gmra.mrb[8].mxu1 %vm1462_vm3, %v3260_v30  ;;  %3419 = vmatmul.mubr.msk.bf16.vlgmr.msra.gmra.mrb[12].mxu0 %vm1462_vm3, %v3261_v31  ;;  %v858_v31 = vpack.i.b16 %v857_v28, %v856_v23 }
 0x25e   : > { %3423 = vmatpush3.bf16.xpose.msra.mxu1 %v1743_v33  ;;  %3429 = vmatpush3.bf16.xpose.msra.mxu0 %v1789_v34 }
 0x25f   : > { %3424 = vmatprep.mubr.msk.bf16.mxu1 %vm3922_vm1, %v3921_v3  ;;  %3430 = vmatprep.mubr.msk.bf16.mxu0 %vm3922_vm1, %v3921_v3 }
 0x260   : > { %3434 = vmatprep.subr.bf16.mxu1 %v3921_v3  ;;  %3440 = vmatprep.subr.bf16.mxu0 %v3921_v3 }
 0x265   : > { %3425 = vmatmul.mubr.msk.bf16.vlgmr.msra.gmra.mrb[12].mxu1 %vm1462_vm3, %v3262_v38  ;;  %3431 = vmatmul.mubr.msk.bf16.vlgmr.msra.gmra.mrb[16].mxu0 %vm1462_vm3, %v3263_v39  ;;  %v913_v39 = vrot.slane %v854_v22, %v4326_v37 }
 0x266   : > { %3436 = vmatprep.mubr.msk.bf16.mxu1 %vm3922_vm1, %v3921_v3  ;;  %3442 = vmatprep.mubr.msk.bf16.mxu0 %vm3922_vm1, %v3921_v3 }
 0x320   : > { %v4402_v40 = vpop.f32.mrb[0].mxu1  ;;  %v4404_v41 = vpop.f32.mrb[4].mxu0 }
 0x321   : > { %v3390_v42 = vpop.f32.mrb[1].mxu1  ;;  %v3396_v43 = vpop.f32.mrb[5].mxu0  ;;  %v1831_v44 = vsel %vm1462_vm3, %v4402_v40, -inf  ;;  %v1834_v45 = vsel %vm1462_vm3, %v4404_v41, -inf }
 0x322   : > { %1832 = vmax.xlane.f32.xlu1 %v1831_v44  ;;  %v1506_v46 = vpop.f32.mrb[2].mxu1  ;;  %1835 = vmax.xlane.f32.xlu0 %v1834_v45  ;;  %v1552_v47 = vpop.f32.mrb[6].mxu0  ;;  %v1040_v44 = vcombine.high %v858_v31, %v869_v21 }
 0x323   : > { %v3391_v49 = vpop.f32.mrb[3].mxu1  ;;  %v3397_v50 = vpop.f32.mrb[7].mxu0 }
 0x324   : > { %v1047_v50 = vrot.slane %v858_v31, %v4326_v37 }
 0x328   : > { %v4410_v51 = vpop.f32.mrb[4].mxu1  ;;  %v4412_v52 = vpop.f32.mrb[8].mxu0 }
 0x329   : > { %v3402_v53 = vpop.f32.mrb[5].mxu1  ;;  %v3408_v54 = vpop.f32.mrb[9].mxu0  ;;  %v1837_v12 = vsel %vm1462_vm3, %v4410_v51, -inf  ;;  %v1840_v13 = vsel %vm1462_vm3, %v4412_v52, -inf }
 0x32a   : > { %v1598_v55 = vpop.f32.mrb[6].mxu1  ;;  %v1644_v56 = vpop.f32.mrb[10].mxu0 }
 0x32b   : > { %v3403_v57 = vpop.f32.mrb[7].mxu1  ;;  %v3409_v58 = vpop.f32.mrb[11].mxu0 }
 0x32c   : > { %v1054_v58 = vrot.slane %v1040_v44, %v4326_v37 }
 0x330   : > { %v4414_v59 = vpop.f32.mrb[8].mxu1  ;;  %v4416_v60 = vpop.f32.mrb[12].mxu0 }
 0x331   : > { %v3414_v61 = vpop.f32.mrb[9].mxu1  ;;  %v3420_v62 = vpop.f32.mrb[13].mxu0  ;;  %v1843_v14 = vsel %vm1462_vm3, %v4414_v59, -inf }
 0x332   : > { %v1690_v63 = vpop.f32.mrb[10].mxu1  ;;  %v1736_v0 = vpop.f32.mrb[14].mxu0 }
 0x333   : > { %816 = vrot.lane.b32.xlu1 %v4313_v15, %s3934_s16  ;;  %v3415_v1 = vpop.f32.mrb[11].mxu1  ;;  %v3421_v2 = vpop.f32.mrb[15].mxu0 }
 0x338   : > { %v4419_v4 = vpop.f32.mrb[12].mxu1  ;;  %818 = vrot.lane.b32.xlu0 %v4313_v15, %s3935_s12  ;;  %v4422_v5 = vpop.f32.mrb[16].mxu0  ;;  %v1846_v15 = vsel %vm1462_vm3, %v4416_v60, -inf }
 0x339   : > { %v3426_v6 = vpop.f32.mrb[13].mxu1  ;;  %v3432_v7 = vpop.f32.mrb[17].mxu0  ;;  %v1849_v16 = vsel %vm1462_vm3, %v4419_v4, -inf  ;;  %v1852_v17 = vsel %vm1462_vm3, %v4422_v5, -inf }
 0x33a   : > { %v1782_v8 = vpop.f32.mrb[14].mxu1  ;;  %v1828_v9 = vpop.f32.mrb[18].mxu0 }
 0x33b   : > { %v3427_v10 = vpop.f32.mrb[15].mxu1  ;;  %v3433_v11 = vpop.f32.mrb[19].mxu0 }
 0x357   : > { %1838 = vmax.xlane.f32.xlu1 %v1837_v12  ;;  %1841 = vmax.xlane.f32.xlu0 %v1840_v13 }
 0x35b   : > { %1844 = vmax.xlane.f32.xlu0 %v1843_v14  ;;  %1847 = vmax.xlane.f32.xlu1 %v1846_v15 }
 0x35f   : > { %1850 = vmax.xlane.f32.xlu0 %v1849_v16  ;;  %1853 = vmax.xlane.f32.xlu1 %v1852_v17 }
 0x3af   : > { %v1833_v24 = vpop.xlane.xlu1 %1832  ;;  %v1836_v25 = vpop.xlane.xlu0 %1835 }
 0x3b0   : > { %v1855_v26 = vsub.f32 %v4402_v40, %v1833_v24  ;;  %v1856_v27 = vsub.f32 %v4404_v41, %v1836_v25  ;;  %v920_v41 = vrot.slane %v906_v32, %v4326_v37 }
 0x3b2   : > { %v1863_v29 = vmul.f32 1.442695, %v1855_v26  ;;  %v1865_v30 = vmul.f32 1.442695, %v1856_v27 }
 0x3b3   : > { %v817_v33 = vpop.permute.xlu1 %816  ;;  %v819_v34 = vpop.permute.xlu0 %818 }
 0x3b4   : > { %3630 = vpow2.f32 %v1863_v29  ;;  %v864_v35 = vshrl.u32 %v817_v33, 16  ;;  %v862_v36 = vpack.i.b16 %v819_v34, %v817_v33  ;;  %v865_v38 = vshrl.u32 %v819_v34, 16 }
 0x3b5   : > { %3632 = vpow2.f32 %v1865_v30 }
 0x3b6   : > { %v866_v42 = vpack.i.b16 %v865_v38, %v864_v35  ;;  %v921_v43 = vcombine.high %v862_v36, %v869_v21  ;;  %v928_v40 = vrot.slane %v862_v36, %v4326_v37 }
 0x3b8   : > { %v935_v45 = vrot.slane %v921_v43, %v4326_v37  ;;  %v968_v46 = vcombine.low %v913_v39, %v928_v40  ;;  %v969_v47 = vcombine.high %v913_v39, %v928_v40  ;;  %v1055_v49 = vcombine.high %v866_v42, %v869_v21 }
 0x3b9   : > { %v1062_v53 = vrot.slane %v866_v42, %v4326_v37 }
 0x3ba   : > { %v976_v54 = vrot.slane %v968_v46, %v4328_v48  ;;  %v983_v55 = vrot.slane %v969_v47, %v4328_v48  ;;  %v984_v56 = vcombine.low %v920_v41, %v935_v45  ;;  %v985_v57 = vcombine.high %v920_v41, %v935_v45 }
 0x3bb   : > { %v1069_v61 = vrot.slane %v1055_v49, %v4326_v37  ;;  %v1102_v62 = vcombine.low %v1047_v50, %v1062_v53  ;;  %v1103_v63 = vcombine.high %v1047_v50, %v1062_v53 }
 0x3bc   : > { %v992_v0 = vrot.slane %v984_v56, %v4328_v48  ;;  %v999_v1 = vrot.slane %v985_v57, %v4328_v48  ;;  %v3241_v2 = vcombine.low %v976_v54, %v983_v55  ;;  %v3243_v6 = vcombine.high %v976_v54, %v983_v55 }
 0x3bd   : > { %v1110_v7 = vrot.slane %v1102_v62, %v4328_v48  ;;  %v1117_v8 = vrot.slane %v1103_v63, %v4328_v48  ;;  %v1118_v9 = vcombine.low %v1054_v58, %v1069_v61  ;;  %v1119_v10 = vcombine.high %v1054_v58, %v1069_v61 }
 0x3be   : > { %v3631_v11 = vpop.eup %3630  ;;  %v1157_v12 = vrot.slane %v3241_v2, %v4326_v37  ;;  %v1173_v13 = vrot.slane %v3243_v6, %v4326_v37  ;;  %v3245_v14 = vcombine.low %v992_v0, %v999_v1  ;;  %v3247_v15 = vcombine.high %v992_v0, %v999_v1 }
 0x3bf   : > { %v3633_v16 = vpop.eup %3632  ;;  %v1126_v17 = vrot.slane %v1118_v9, %v4328_v48  ;;  %v1133_v18 = vrot.slane %v1119_v10, %v4328_v48  ;;  %v3249_v19 = vcombine.low %v1110_v7, %v1117_v8  ;;  %v3251_v21 = vcombine.high %v1110_v7, %v1117_v8 }
 0x3c0   : > { %v1189_v22 = vrot.slane %v3245_v14, %v4326_v37  ;;  %v1205_v23 = vrot.slane %v3247_v15, %v4326_v37  ;;  %v1879_v24 = vsel %vm1462_vm3, %v3631_v11, 0.0  ;;  %v1882_v25 = vsel %vm1462_vm3, %v3633_v16, 0.0 }
 0x3c1   : > { %v1275_v26 = vrot.slane %v3249_v19, %v4326_v37  ;;  %v1291_v27 = vrot.slane %v3251_v21, %v4326_v37  ;;  %v3253_v28 = vcombine.low %v1126_v17, %v1133_v18  ;;  %v3255_v29 = vcombine.high %v1126_v17, %v1133_v18  ;;  %1880 = vadd.xlane.f32.xlu0 %v1879_v24 }
 0x3c2   : > { %1883 = vadd.xlane.f32.xlu1 %v1882_v25  ;;  %v1222_v30 = vcombine.low %v1157_v12, %v1173_v13  ;;  %v1246_v31 = vcombine.low %v1189_v22, %v1205_v23  ;;  %v1903_v56 = vpack.c.bf16 %v3631_v11, %v3631_v11  ;;  %v1904_v57 = vpack.c.bf16 %v3633_v16, %v3633_v16 }
 0x3c3   : > { %v1307_v32 = vrot.slane %v3253_v28, %v4326_v37  ;;  %v1323_v33 = vrot.slane %v3255_v29, %v4326_v37  ;;  %v1340_v34 = vcombine.low %v1275_v26, %v1291_v27 }
 0x3c4   : > { %v1253_v35 = vrot.slane %v1246_v31, %v4328_v48  ;;  %v1229_v36 = vrot.slane %v1222_v30, %v4328_v48 }
 0x3c5   : > { %v1364_v38 = vcombine.low %v1307_v32, %v1323_v33  ;;  %v1347_v42 = vrot.slane %v1340_v34, %v4328_v48 }
 0x3c6   : > { %v1258_v39 = vcombine.low %v1229_v36, %v1253_v35  ;;  %v1259_v16 = vcombine.high %v1229_v36, %v1253_v35 }
 0x3c7   : > { %v1371_v43 = vrot.slane %v1364_v38, %v4328_v48 }
 0x3c8   : > { %v1405_v44 = vshrl.u32 %v1258_v39, 16  ;;  %v1411_v26 = vshrl.u32 %v1259_v16, 16 }
 0x3c9   : > { %v1376_v40 = vcombine.low %v1347_v42, %v1371_v43  ;;  %v1377_v11 = vcombine.high %v1347_v42, %v1371_v43 }
 0x3cb   : > { %v1404_v41 = vpack.i.b16 %v1376_v40, %v1258_v39  ;;  %v1406_v45 = vshrl.u32 %v1376_v40, 16  ;;  %v1410_v17 = vpack.i.b16 %v1377_v11, %v1259_v16 }
 0x3cd   : > { %v3272_v46 = vcombine.low %v1404_v41, %v1404_v41  ;;  %v3273_v47 = vcombine.high %v1404_v41, %v1404_v41  ;;  %v1407_v49 = vpack.i.b16 %v1406_v45, %v1405_v44  ;;  %v3277_v22 = vcombine.high %v1410_v17, %v1410_v17 }
 0x3cf   : > { %v1916_v50 = vsel %vm1914_vm4, %v3272_v46, 0  ;;  %v1962_v53 = vsel %vm1914_vm4, %v3273_v47, 0  ;;  %v3274_v54 = vcombine.low %v1407_v49, %v1407_v49  ;;  %v3275_v55 = vcombine.high %v1407_v49, %v1407_v49  ;;  %v3622_v47 = vld [vmem:[%s4270_s24] sm:$0xff]  }
 0x3d0   : > { %3435 = vmatpush3.bf16.msra.mxu1 %v1916_v50  ;;  %3441 = vmatpush3.bf16.msra.mxu0 %v1962_v53  ;;  %v2146_v30 = vsel %vm1914_vm4, %v3277_v22, 0 }
 0x3d1   : > { %3446 = vmatprep.subr.bf16.mxu1 %v3921_v3  ;;  %3452 = vmatprep.subr.bf16.mxu0 %v3921_v3  ;;  %v2008_v58 = vsel %vm1914_vm4, %v3274_v54, 0  ;;  %v2054_v61 = vsel %vm1914_vm4, %v3275_v55, 0 }
 0x3d3   : > { %3437 = vmatmul.mubr.msk.bf16.vlgmr.msra.gmra.mrb[16].mxu1 %vm1462_vm3, %v1903_v56  ;;  %3443 = vmatmul.mubr.msk.bf16.vlgmr.msra.gmra.mrb[20].mxu0 %vm1462_vm3, %v1904_v57 }
 0x3d4   : > { %3447 = vmatpush3.bf16.msra.mxu1 %v2008_v58  ;;  %3453 = vmatpush3.bf16.msra.mxu0 %v2054_v61 }
 0x3d5   : > { %3448 = vmatprep.mubr.msk.bf16.mxu1 %vm3922_vm1, %v3921_v3  ;;  %3454 = vmatprep.mubr.msk.bf16.mxu0 %vm3922_vm1, %v3921_v3 }
 0x3d6   : > { %3458 = vmatprep.subr.bf16.mxu1 %v3921_v3  ;;  %3464 = vmatprep.subr.bf16.mxu0 %v3921_v3 }
 0x3e4   : > { %v1839_v62 = vpop.xlane.xlu1 %1838  ;;  %v1842_v63 = vpop.xlane.xlu0 %1841 }
 0x3e5   : > { %v1857_v0 = vsub.f32 %v4410_v51, %v1839_v62  ;;  %v1858_v1 = vsub.f32 %v4412_v52, %v1842_v63 }
 0x3e7   : > { %v1867_v2 = vmul.f32 1.442695, %v1857_v0  ;;  %v1869_v6 = vmul.f32 1.442695, %v1858_v1 }
 0x3e8   : > { %v1845_v7 = vpop.xlane.xlu0 %1844  ;;  %v1848_v8 = vpop.xlane.xlu1 %1847 }
 0x3e9   : > { %3634 = vpow2.f32 %v1867_v2  ;;  %v1859_v9 = vsub.f32 %v4414_v59, %v1845_v7  ;;  %v1860_v10 = vsub.f32 %v4416_v60, %v1848_v8  ;;  %v3276_v59 = vcombine.low %v1410_v17, %v1410_v17 }
 0x3ea   : > { %3636 = vpow2.f32 %v1869_v6  ;;  %v1412_v60 = vshrl.u32 %v1377_v11, 16 }
 0x3eb   : > { %v1871_v12 = vmul.f32 1.442695, %v1859_v9  ;;  %v1873_v13 = vmul.f32 1.442695, %v1860_v10 }
 0x3ec   : > { %v1851_v14 = vpop.xlane.xlu0 %1850  ;;  %v1854_v15 = vpop.xlane.xlu1 %1853  ;;  %v1413_v28 = vpack.i.b16 %v1412_v60, %v1411_v26 }
 0x3ed   : > { %3638 = vpow2.f32 %v1871_v12  ;;  %v1861_v51 = vsub.f32 %v4419_v4, %v1851_v14  ;;  %v1862_v52 = vsub.f32 %v4422_v5, %v1854_v15  ;;  %v2100_v5 = vsel %vm1914_vm4, %v3276_v59, 0 }
 0x3ee   : > { %3640 = vpow2.f32 %v1873_v13  ;;  %v3278_v34 = vcombine.low %v1413_v28, %v1413_v28  ;;  %v3279_v36 = vcombine.high %v1413_v28, %v1413_v28 }
 0x3ef   : > { %v1875_v18 = vmul.f32 1.442695, %v1861_v51  ;;  %v1877_v19 = vmul.f32 1.442695, %v1862_v52 }
 0x3f0   : > { %v2192_v41 = vsel %vm1914_vm4, %v3278_v34, 0  ;;  %v2238_v44 = vsel %vm1914_vm4, %v3279_v36, 0 }
 0x3f1   : > { %3642 = vpow2.f32 %v1875_v18 }
 0x3f2   : > { %3644 = vpow2.f32 %v1877_v19 }
 0x3f3   : > { %v3635_v21 = vpop.eup %3634 }
 0x3f4   : > { %v3637_v23 = vpop.eup %3636  ;;  %v1885_v24 = vsel %vm1462_vm3, %v3635_v21, 0.0  ;;  %v1905_v25 = vpack.c.bf16 %v3635_v21, %v3635_v21 }
 0x3f5   : > { %1886 = vadd.xlane.f32.xlu0 %v1885_v24  ;;  %v1888_v4 = vsel %vm1462_vm3, %v3637_v23, 0.0  ;;  %v1906_v27 = vpack.c.bf16 %v3637_v23, %v3637_v23 }
 0x3f6   : > { %1889 = vadd.xlane.f32.xlu1 %v1888_v4  ;;  %3449 = vmatmul.mubr.msk.bf16.vlgmr.msra.gmra.mrb[20].mxu1 %vm1462_vm3, %v1905_v25 }
 0x3f7   : > { %v3639_v29 = vpop.eup %3638  ;;  %3455 = vmatmul.mubr.msk.bf16.vlgmr.msra.gmra.mrb[24].mxu0 %vm1462_vm3, %v1906_v27  ;;  %3459 = vmatpush3.bf16.msra.mxu1 %v2100_v5 }
 0x3f8   : > { %v3641_v31 = vpop.eup %3640  ;;  %3465 = vmatpush3.bf16.msra.mxu0 %v2146_v30  ;;  %v1891_v32 = vsel %vm1462_vm3, %v3639_v29, 0.0  ;;  %3460 = vmatprep.mubr.msk.bf16.mxu1 %vm3922_vm1, %v3921_v3  ;;  %v1907_v42 = vpack.c.bf16 %v3639_v29, %v3639_v29 }
 0x3f9   : > { %1892 = vadd.xlane.f32.xlu0 %v1891_v32  ;;  %v1894_v33 = vsel %vm1462_vm3, %v3641_v31, 0.0  ;;  %3466 = vmatprep.mubr.msk.bf16.mxu0 %vm3922_vm1, %v3921_v3  ;;  %v1908_v40 = vpack.c.bf16 %v3641_v31, %v3641_v31 }
 0x3fa   : > { %1895 = vadd.xlane.f32.xlu1 %v1894_v33  ;;  %3470 = vmatprep.subr.bf16.mxu1 %v3921_v3 }
 0x3fb   : > { %v3643_v35 = vpop.eup %3642  ;;  %3476 = vmatprep.subr.bf16.mxu0 %v3921_v3 }
 0x3fc   : > { %v3645_v38 = vpop.eup %3644  ;;  %v1897_v39 = vsel %vm1462_vm3, %v3643_v35, 0.0  ;;  %v1909_v45 = vpack.c.bf16 %v3643_v35, %v3643_v35 }
 0x3fd   : > { %1898 = vadd.xlane.f32.xlu0 %v1897_v39  ;;  %v1900_v43 = vsel %vm1462_vm3, %v3645_v38, 0.0  ;;  %v1910_v46 = vpack.c.bf16 %v3645_v38, %v3645_v38 }
 0x3fe   : > { %1901 = vadd.xlane.f32.xlu1 %v1900_v43  ;;  %3461 = vmatmul.mubr.msk.bf16.vlgmr.msra.gmra.mrb[24].mxu1 %vm1462_vm3, %v1907_v42 }
 0x3ff   : > { %3467 = vmatmul.mubr.msk.bf16.vlgmr.msra.gmra.mrb[28].mxu0 %vm1462_vm3, %v1908_v40  ;;  %3471 = vmatpush3.bf16.msra.mxu1 %v2192_v41 }
 0x400   : > { %3477 = vmatpush3.bf16.msra.mxu0 %v2238_v44  ;;  %3472 = vmatprep.mubr.msk.bf16.mxu1 %vm3922_vm1, %v3921_v3 }
 0x401   : > { %3478 = vmatprep.mubr.msk.bf16.mxu0 %vm3922_vm1, %v3921_v3  ;;  %3482 = vmatprep.subr.bf16.mxu1 %v3921_v3 }
 0x402   : > { %3490 = vmatprep.subr.bf16.mxu0 %v3921_v3 }
 0x406   : > { %3473 = vmatmul.mubr.msk.bf16.vlgmr.msra.gmra.mrb[28].mxu1 %vm1462_vm3, %v1909_v45 }
 0x407   : > { %3479 = vmatmul.mubr.msk.bf16.vlgmr.msra.gmra.mrb[32].mxu0 %vm1462_vm3, %v1910_v46  ;;  %3486 = vmatprep.mubr.msk.bf16.mxu1 %vm3922_vm1, %v3921_v3 }
 0x408   : > { %3494 = vmatprep.mubr.msk.bf16.mxu0 %vm3922_vm1, %v3921_v3  ;;  %3483 = vmatpush3.bf16.msra.mxu1 %v3622_v47 }
 0x409   : > { %3484 = vmatprep.subr.bf16.mxu1 %v3921_v3 }
 0x44e   : > { %v1881_v61 = vpop.xlane.xlu0 %1880 }
 0x44f   : > { %v1884_v62 = vpop.xlane.xlu1 %1883  ;;  %3646 = vrcp.f32 %v1881_v61 }
 0x450   : > { %3648 = vrcp.f32 %v1884_v62 }
 0x459   : > { %v3647_v2 = vpop.eup %3646 }
 0x45a   : > { %v3649_v6 = vpop.eup %3648 }
 0x482   : > { %v1887_v63 = vpop.xlane.xlu0 %1886 }
 0x483   : > { %v1890_v0 = vpop.xlane.xlu1 %1889  ;;  %3650 = vrcp.f32 %v1887_v63 }
 0x484   : > { %3652 = vrcp.f32 %v1890_v0 }
 0x486   : > { %v1893_v1 = vpop.xlane.xlu0 %1892 }
 0x487   : > { %v1896_v8 = vpop.xlane.xlu1 %1895  ;;  %3654 = vrcp.f32 %v1893_v1 }
 0x488   : > { %3656 = vrcp.f32 %v1896_v8 }
 0x48a   : > { %v1899_v11 = vpop.xlane.xlu0 %1898 }
 0x48b   : > { %v1902_v22 = vpop.xlane.xlu1 %1901  ;;  %3658 = vrcp.f32 %v1899_v11 }
 0x48c   : > { %3660 = vrcp.f32 %v1902_v22 }
 0x48d   : > { %v3651_v10 = vpop.eup %3650 }
 0x48e   : > { %v3653_v13 = vpop.eup %3652 }
 0x491   : > { %v3655_v39 = vpop.eup %3654 }
 0x492   : > { %v3657_v43 = vpop.eup %3656 }
 0x495   : > { %v3659_v44 = vpop.eup %3658 }
 0x496   : > { %v3661_v46 = vpop.eup %3660 }
 0x4a6   : > { %v1952_v49 = vpop.f32.mrb[16].mxu1  ;;  %v1998_v50 = vpop.f32.mrb[20].mxu0 }
 0x4a7   : > { %v3438_v53 = vpop.f32.mrb[17].mxu1  ;;  %v3444_v54 = vpop.f32.mrb[21].mxu0  ;;  %v2288_v7 = vmul.f32 %v3647_v2, %v1952_v49  ;;  %v2289_v9 = vmul.f32 %v3649_v6, %v1998_v50 }
 0x4a8   : > { %v1955_v55 = vpop.f32.mrb[18].mxu1  ;;  %v2001_v56 = vpop.f32.mrb[22].mxu0 }
 0x4a9   : > { %v3439_v57 = vpop.f32.mrb[19].mxu1  ;;  %v3445_v58 = vpop.f32.mrb[23].mxu0  ;;  %v2296_v14 = vpack.c.bf16 %v2288_v7, %v2288_v7  ;;  %v2297_v52 = vpack.c.bf16 %v2289_v9, %v2289_v9 }
 0x4ab   : > { %v2307_v25 = vshrl.u32 %v2296_v14, 16  ;;  %v2319_v27 = vshrl.u32 %v2297_v52, 16 }
 0x4c9   : > { %v2044_v12 = vpop.f32.mrb[20].mxu1 }
 0x4ca   : > { %v2290_v15 = vmul.f32 %v3651_v10, %v2044_v12  ;;  %v2090_v16 = vpop.f32.mrb[24].mxu0  ;;  %v3450_v51 = vpop.f32.mrb[21].mxu1 }
 0x4cb   : > { %v2291_v17 = vmul.f32 %v3653_v13, %v2090_v16  ;;  %v3456_v18 = vpop.f32.mrb[25].mxu0  ;;  %v2047_v19 = vpop.f32.mrb[22].mxu1 }
 0x4cc   : > { %v2298_v59 = vpack.c.bf16 %v2290_v15, %v2290_v15  ;;  %v2093_v60 = vpop.f32.mrb[26].mxu0  ;;  %v3451_v21 = vpop.f32.mrb[23].mxu1 }
 0x4cd   : > { %v2299_v23 = vpack.c.bf16 %v2291_v17, %v2291_v17  ;;  %v3457_v24 = vpop.f32.mrb[27].mxu0 }
 0x4ce   : > { %v2306_v26 = vpack.i.b16 %v2298_v59, %v2296_v14  ;;  %v2308_v4 = vshrl.u32 %v2298_v59, 16 }
 0x4cf   : > { %v2318_v5 = vpack.i.b16 %v2299_v23, %v2297_v52  ;;  %v2320_v28 = vshrl.u32 %v2299_v23, 16 }
 0x4d0   : > { %v2309_v29 = vpack.i.b16 %v2308_v4, %v2307_v25  ;;  %v2335_v10 = vrot.slane %v2306_v26, %v4326_v37 }
 0x4d1   : > { %v2321_v30 = vpack.i.b16 %v2320_v28, %v2319_v27  ;;  %v2136_v31 = vpop.f32.mrb[24].mxu1  ;;  %v2403_v13 = vrot.slane %v2318_v5, %v4326_v37 }
 0x4d2   : > { %v2182_v32 = vpop.f32.mrb[28].mxu0  ;;  %v3462_v33 = vpop.f32.mrb[25].mxu1  ;;  %v2292_v40 = vmul.f32 %v3655_v39, %v2136_v31  ;;  %v2369_v16 = vrot.slane %v2309_v29, %v4326_v37 }
 0x4d3   : > { %v3468_v34 = vpop.f32.mrb[29].mxu0  ;;  %v2139_v35 = vpop.f32.mrb[26].mxu1  ;;  %v2293_v41 = vmul.f32 %v3657_v43, %v2182_v32  ;;  %v2437_v18 = vrot.slane %v2321_v30, %v4326_v37 }
 0x4d4   : > { %v2185_v36 = vpop.f32.mrb[30].mxu0  ;;  %v3463_v38 = vpop.f32.mrb[27].mxu1  ;;  %v2300_v47 = vpack.c.bf16 %v2292_v40, %v2292_v40 }
 0x4d5   : > { %v3469_v42 = vpop.f32.mrb[31].mxu0  ;;  %v2301_v54 = vpack.c.bf16 %v2293_v41, %v2293_v41 }
 0x4d6   : > { %v2313_v1 = vshrl.u32 %v2300_v47, 16 }
 0x4d7   : > { %v2325_v7 = vshrl.u32 %v2301_v54, 16 }
 0x4d9   : > { %v2228_v45 = vpop.f32.mrb[28].mxu1 }
 0x4da   : > { %v2294_v49 = vmul.f32 %v3659_v44, %v2228_v45  ;;  %v2274_v50 = vpop.f32.mrb[32].mxu0  ;;  %v3474_v53 = vpop.f32.mrb[29].mxu1 }
 0x4db   : > { %v2295_v55 = vmul.f32 %v3661_v46, %v2274_v50  ;;  %v3480_v56 = vpop.f32.mrb[33].mxu0  ;;  %v2231_v57 = vpop.f32.mrb[30].mxu1  ;;  %v3623_v53 = vld [vmem:[%s4270_s24 + $0x8] sm:$0xff]   ;;  %s3937_s24 = smov 8  }
 0x4dc   : > { %v2302_v58 = vpack.c.bf16 %v2294_v49, %v2294_v49  ;;  %v2277_v61 = vpop.f32.mrb[34].mxu0  ;;  %v3475_v62 = vpop.f32.mrb[31].mxu1  ;;  %3485 = vmatpush3.bf16.msra.mxu1 %v3623_v53 }
 0x4dd   : > { %v2303_v63 = vpack.c.bf16 %v2295_v55, %v2295_v55  ;;  %v3481_v0 = vpop.f32.mrb[35].mxu0  ;;  %3498 = vmatprep.subr.bf16.mxu1 %v3921_v3 }
 0x4de   : > { %v2312_v2 = vpack.i.b16 %v2302_v58, %v2300_v47  ;;  %v2314_v6 = vshrl.u32 %v2302_v58, 16 }
 0x4df   : > { %v2324_v8 = vpack.i.b16 %v2303_v63, %v2301_v54  ;;  %v2326_v9 = vshrl.u32 %v2303_v63, 16 }
 0x4e0   : > { %v2315_v11 = vpack.i.b16 %v2314_v6, %v2313_v1  ;;  %v2343_v12 = vrot.slane %v2312_v2, %v4326_v37 }
 0x4e1   : > { %v2327_v14 = vpack.i.b16 %v2326_v9, %v2325_v7  ;;  %v2411_v15 = vrot.slane %v2324_v8, %v4326_v37 }
 0x4e2   : > { %v2344_v51 = vcombine.low %v2335_v10, %v2343_v12  ;;  %v2345_v52 = vcombine.high %v2335_v10, %v2343_v12  ;;  %v2377_v17 = vrot.slane %v2315_v11, %v4326_v37 }
 0x4e3   : > { %v2412_v19 = vcombine.low %v2403_v13, %v2411_v15  ;;  %v2413_v59 = vcombine.high %v2403_v13, %v2411_v15  ;;  %v2445_v60 = vrot.slane %v2327_v14, %v4326_v37 }
 0x4e4   : > { %v2352_v21 = vrot.slane %v2344_v51, %v4328_v48  ;;  %v2359_v22 = vrot.slane %v2345_v52, %v4328_v48  ;;  %v2378_v23 = vcombine.low %v2369_v16, %v2377_v17  ;;  %v2379_v24 = vcombine.high %v2369_v16, %v2377_v17 }
 0x4e5   : > { %v2420_v25 = vrot.slane %v2412_v19, %v4328_v48  ;;  %v2427_v26 = vrot.slane %v2413_v59, %v4328_v48  ;;  %v2446_v4 = vcombine.low %v2437_v18, %v2445_v60  ;;  %v2447_v27 = vcombine.high %v2437_v18, %v2445_v60 }
 0x4e6   : > { %v2386_v5 = vrot.slane %v2378_v23, %v4328_v48  ;;  %v2393_v28 = vrot.slane %v2379_v24, %v4328_v48  ;;  %v2464_v29 = vcombine.low %v2352_v21, %v2359_v22  ;;  %v3296_v30 = vcombine.high %v2352_v21, %v2359_v22 }
 0x4e7   : > { %v2454_v31 = vrot.slane %v2446_v4, %v4328_v48  ;;  %v2461_v32 = vrot.slane %v2447_v27, %v4328_v48  ;;  %v2514_v33 = vcombine.low %v2420_v25, %v2427_v26  ;;  %v3298_v34 = vcombine.high %v2420_v25, %v2427_v26  ;;  %v3304_v25 = vld [vmem:[%s4729_s14] ss:$0 sm:$0xff] }
 0x4e8   : > { %v2471_v35 = vrot.slane %v2464_v29, %v4326_v37  ;;  %v2479_v36 = vrot.slane %v3296_v30, %v4326_v37  ;;  %v2489_v38 = vcombine.low %v2386_v5, %v2393_v28  ;;  %v3297_v39 = vcombine.high %v2386_v5, %v2393_v28  ;;  %v3674_v30 = vld [vmem:[#allocation11] sm:$0xff] }
 0x4e9   : > { %v2521_v42 = vrot.slane %v2514_v33, %v4326_v37  ;;  %v2529_v43 = vrot.slane %v3298_v34, %v4326_v37  ;;  %v2539_v40 = vcombine.low %v2454_v31, %v2461_v32  ;;  %v3299_v41 = vcombine.high %v2454_v31, %v2461_v32  ;;  %v3675_v33 = vld [vmem:[#allocation11 + $0x8] sm:$0xff] }
 0x4ea   : > { %v2496_v44 = vrot.slane %v2489_v38, %v4326_v37  ;;  %v2504_v45 = vrot.slane %v3297_v39, %v4326_v37  ;;  %v2480_v46 = vcombine.low %v2471_v35, %v2479_v36 }
 0x4eb   : > { %v2546_v47 = vrot.slane %v2539_v40, %v4326_v37  ;;  %v2554_v49 = vrot.slane %v3299_v41, %v4326_v37  ;;  %v2530_v50 = vcombine.low %v2521_v42, %v2529_v43 }
 0x4ec   : > { %v2487_v54 = vrot.slane %v2480_v46, %v4328_v48  ;;  %v2505_v55 = vcombine.low %v2496_v44, %v2504_v45 }
 0x4ed   : > { %v2537_v56 = vrot.slane %v2530_v50, %v4328_v48  ;;  %v2555_v57 = vcombine.low %v2546_v47, %v2554_v49  ;;  %v3624_v47 = vld [vmem:[%s4275_s25] sm:$0xff]   ;;  %v3625_v49 = vld [vmem:[%s4275_s25 + $0x8] sm:$0xff]   ;;  %s4731_s25 = scalar_lea.vmem [#allocation8], %s4242_s10 }
 0x4ee   : > { %v2512_v58 = vrot.slane %v2505_v55, %v4328_v48  ;;  %v2488_v61 = vcombine.high %v2487_v54, %v3936_v20  ;;  %v2567_v63 = vshrl.u32 %v2487_v54, 16  ;;  %3491 = vmatpush3.bf16.msra.mxu0 %v3624_v47 }
 0x4ef   : > { %v2562_v62 = vrot.slane %v2555_v57, %v4328_v48  ;;  %v2538_v37 = vcombine.high %v2537_v56, %v3936_v20  ;;  %v2579_v1 = vshrl.u32 %v2537_v56, 16  ;;  %3492 = vmatprep.subr.bf16.mxu0 %v3921_v3 }
 0x4f0   : > { %v2568_v0 = vshrl.u32 %v2512_v58, 16  ;;  %v2513_v2 = vcombine.high %v2512_v58, %v3936_v20  ;;  %v2566_v6 = vpack.i.b16 %v2512_v58, %v2487_v54  ;;  %v2573_v9 = vshrl.u32 %v2488_v61, 16 }
 0x4f1   : > { %v2580_v7 = vshrl.u32 %v2562_v62, 16  ;;  %v2563_v8 = vcombine.high %v2562_v62, %v3936_v20  ;;  %v2578_v10 = vpack.i.b16 %v2562_v62, %v2537_v56  ;;  %v2585_v14 = vshrl.u32 %v2538_v37, 16  ;;  %v3308_v62 = vld [vmem:[%s4730_s0] ss:$0 sm:$0xff] }
 0x4f2   : > { %v2569_v11 = vpack.i.b16 %v2568_v0, %v2567_v63  ;;  %v2572_v12 = vpack.i.b16 %v2513_v2, %v2488_v61  ;;  %v2574_v13 = vshrl.u32 %v2513_v2, 16  ;;  %3493 = vmatpush3.bf16.msra.mxu0 %v3625_v49 }
 0x4f3   : > { %v2581_v15 = vpack.i.b16 %v2580_v7, %v2579_v1  ;;  %v2584_v16 = vpack.i.b16 %v2563_v8, %v2538_v37  ;;  %v2586_v48 = vshrl.u32 %v2563_v8, 16  ;;  %v3300_v51 = vcombine.low %v2566_v6, %v2578_v10  ;;  %v3309_v1 = vld [vmem:[%s4731_s25] ss:$0 sm:$0xff]  ;;  %v3627_v10 = vld [vmem:[%s4281_s17 + $0x8] sm:$0xff]  }
 0x4f4   : > { %v2575_v52 = vpack.i.b16 %v2574_v13, %v2573_v9  ;;  %v3626_v9 = vld [vmem:[%s4281_s17] sm:$0xff]  }
 0x4f5   : > { %v3301_v17 = vcombine.low %v2569_v11, %v2581_v15  ;;  %v3302_v18 = vcombine.low %v2572_v12, %v2584_v16  ;;  %v2587_v19 = vpack.i.b16 %v2586_v48, %v2585_v14  ;;  %v3628_v11 = vld [vmem:[%s4281_s17 + $0x10] sm:$0xff]   ;;  %v3629_v12 = vld [vmem:[%s4281_s17 + $0x18] sm:$0xff]   ;;  %v3310_v13 = vld [vmem:[%s600_s6] ss:$0 sm:$0xff] }
 0x4f7   : > { %2594 = vrot.lane.b32.xlu0 %v3301_v17, %s3937_s24  ;;  %2599 = vrot.lane.b32.xlu1 %v3302_v18, %s3938_s20  ;;  %v3303_v20 = vcombine.low %v2575_v52, %v2587_v19 }
 0x4fb   : > { %2604 = vrot.lane.b32.xlu1 %v3303_v20, %s3939_s27 }
 0x569   : > { %v2595_v59 = vpop.permute.xlu0 %2594  ;;  %v2600_v60 = vpop.permute.xlu1 %2599 }
 0x56a   : > { %v2608_v21 = vsel %vm1462_vm3, %v3300_v51, %v2595_v59 }
 0x56b   : > { %v2611_v22 = vsel %vm2609_vm5, %v2608_v21, %v2600_v60 }
 0x56d   : > { %v2605_v23 = vpop.permute.xlu1 %2604 }
 0x56e   : > { %v2614_v24 = vsel %vm2612_vm6, %v2611_v22, %v2605_v23 }
 0x56f   : > { %3487 = vmatmul.mubr.msk.bf16.vlgmr.msra.gmra.mrb[32].mxu1 %vm751_vm2, %v2614_v24 }
 0x570   : > { %3506 = vmatprep.mubr.msk.bf16.mxu1 %vm3922_vm1, %v3921_v3  ;;  %3499 = vmatpush3.bf16.msra.mxu1 %v3626_v9 }
 0x571   : > { %3500 = vmatprep.subr.bf16.mxu1 %v3921_v3 }
 0x574   : > { %3501 = vmatpush3.bf16.msra.mxu1 %v3627_v10 }
 0x575   : > { %3502 = vmatprep.subr.bf16.mxu1 %v3921_v3 }
 0x578   : > { %3503 = vmatpush3.bf16.msra.mxu1 %v3628_v11 }
 0x579   : > { %3504 = vmatprep.subr.bf16.mxu1 %v3921_v3 }
 0x57c   : > { %3505 = vmatpush3.bf16.msra.mxu1 %v3629_v12 }
 0x642   : > { %v2674_v26 = vpop.f32.mrb[32].mxu1 }
 0x643   : > { %v2675_v4 = vadd.f32 %v3304_v25, %v2674_v26  ;;  %v3488_v27 = vpop.f32.mrb[33].mxu1 }
 0x644   : > { %v2677_v5 = vpop.f32.mrb[34].mxu1 }
 0x645   : > { %v2678_v28 = vadd.f32 %v3304_v25, %v2677_v5  ;;  %v3489_v29 = vpop.f32.mrb[35].mxu1  ;;  %v2681_v31 = vadd.f32 %v3674_v30, %v2675_v4 }
 0x647   : > { %v2685_v32 = vsel %vm751_vm2, %v2681_v31, 0.0  ;;  %v2682_v34 = vadd.f32 %v3675_v33, %v2678_v28 }
 0x648   : > { %2686 = vadd.xlane.f32.xlu0 %v2685_v32 }
 0x649   : > { %v2688_v35 = vsel %vm751_vm2, %v2682_v34, 0.0 }
 0x64a   : > { %2689 = vadd.xlane.f32.xlu1 %v2688_v35 }
 0x6d5   : > { %v2687_v36 = vpop.xlane.xlu0 %2686 }
 0x6d6   : > { %v2692_v38 = vmul.f32 0.03125, %v2687_v36 }
 0x6d7   : > { %v2690_v39 = vpop.xlane.xlu1 %2689 }
 0x6d8   : > { %v2694_v42 = vsub.f32 %v2681_v31, %v2692_v38  ;;  %v2693_v43 = vmul.f32 0.03125, %v2690_v39 }
 0x6da   : > { %v2695_v40 = vsub.f32 %v2682_v34, %v2693_v43  ;;  %v2696_v41 = vmul.f32 %v2694_v42, %v2694_v42 }
 0x6dc   : > { %v2698_v44 = vsel %vm751_vm2, %v2696_v41, 0.0  ;;  %v2697_v45 = vmul.f32 %v2695_v40, %v2695_v40 }
 0x6dd   : > { %2699 = vadd.xlane.f32.xlu0 %v2698_v44 }
 0x6de   : > { %v2701_v46 = vsel %vm751_vm2, %v2697_v45, 0.0 }
 0x6e1   : > { %2702 = vadd.xlane.f32.xlu0 %v2701_v46 }
 0x76a   : > { %v2700_v50 = vpop.xlane.xlu0 %2699 }
 0x76b   : > { %v2704_v53 = vmul.f32 0.03125, %v2700_v50 }
 0x76d   : > { %v2706_v54 = vadd.f32 1e-05, %v2704_v53 }
 0x76e   : > { %v2703_v55 = vpop.xlane.xlu0 %2702 }
 0x76f   : > { %3662 = vrsqrt.f32 %v2706_v54  ;;  %v2705_v56 = vmul.f32 0.03125, %v2703_v55 }
 0x771   : > { %v2707_v57 = vadd.f32 1e-05, %v2705_v56 }
 0x773   : > { %3664 = vrsqrt.f32 %v2707_v57 }
 0x779   : > { %v3663_v58 = vpop.eup %3662 }
 0x77a   : > { %v2710_v61 = vmul.f32 %v3663_v58, %v2694_v42 }
 0x77c   : > { %v2718_v37 = vmul.f32 %v3308_v62, %v2710_v61 }
 0x77d   : > { %v3665_v63 = vpop.eup %3664 }
 0x77e   : > { %v2711_v0 = vmul.f32 %v3665_v63, %v2695_v40  ;;  %v4576_v6 = vadd.f32 %v3309_v1, %v2718_v37 }
 0x780   : > { %v2719_v2 = vmul.f32 %v3308_v62, %v2711_v0 }
 0x782   : > { %v4578_v7 = vadd.f32 %v3309_v1, %v2719_v2 }
 0x784   : > { %v2728_v8 = vpack.c.bf16 %v4578_v7, %v4576_v6 }
 0x786   : > { %3495 = vmatmul.mubr.msk.bf16.vlgmr.msra.gmra.mrb[36].mxu0 %vm751_vm2, %v2728_v8 }
 0x859   : > { %v2789_v14 = vpop.f32.mrb[36].mxu0 }
 0x85a   : > { %v4592_v15 = vadd.f32 %v3310_v13, %v2789_v14  ;;  %v3496_v16 = vpop.f32.mrb[37].mxu0 }
 0x85b   : > { %v2792_v48 = vpop.f32.mrb[38].mxu0 }
 0x85c   : > { %v2798_v51 = vmul.f32 0.70710677, %v4592_v15  ;;  %v2793_v52 = vadd.f32 %v3310_v13, %v2792_v48  ;;  %v3497_v17 = vpop.f32.mrb[39].mxu0 }
 0x85e   : > { %v3314_v18 = vclamps-f32 %v2798_v51, 4.0  ;;  %v2799_v19 = vmul.f32 0.70710677, %v2793_v52  ;;  %v2796_v51 = vmul.f32 0.5, %v4592_v15  ;;  %v2797_v17 = vmul.f32 0.5, %v2793_v52 }
 0x860   : > { %v2804_v20 = vmul.f32 %v3314_v18, %v3314_v18  ;;  %v3315_v59 = vclamps-f32 %v2799_v19, 4.0 }
 0x862   : > { %v2822_v60 = vmul.f32 -1.1791603e-07, %v2804_v20  ;;  %v2805_v21 = vmul.f32 %v3315_v59, %v3315_v59  ;;  %v2806_v26 = vmul.f32 0.00022905065, %v2804_v20 }
 0x864   : > { %v2824_v3 = vadd.f32 2.3547966e-05, %v2822_v60  ;;  %v2823_v22 = vmul.f32 -1.1791603e-07, %v2805_v21  ;;  %v2807_v29 = vmul.f32 0.00022905065, %v2805_v21 }
 0x865   : > { %v2808_v30 = vadd.f32 0.003408291, %v2806_v26 }
 0x866   : > { %v2826_v23 = vmul.f32 %v2824_v3, %v2804_v20  ;;  %v2825_v24 = vadd.f32 2.3547966e-05, %v2823_v22  ;;  %v2809_v35 = vadd.f32 0.003408291, %v2807_v29 }
 0x867   : > { %v2810_v36 = vmul.f32 %v2808_v30, %v2804_v20 }
 0x868   : > { %v2828_v25 = vadd.f32 0.0010179626, %v2826_v23  ;;  %v2827_v4 = vmul.f32 %v2825_v24, %v2805_v21  ;;  %v2811_v40 = vmul.f32 %v2809_v35, %v2805_v21 }
 0x869   : > { %v2812_v41 = vadd.f32 0.050955694, %v2810_v36 }
 0x86a   : > { %v2830_v27 = vmul.f32 %v2828_v25, %v2804_v20  ;;  %v2829_v5 = vadd.f32 0.0010179626, %v2827_v4  ;;  %v2813_v49 = vadd.f32 0.050955694, %v2811_v40  ;;  %v3322_v40 = vld [vmem:[%s710_s29] ss:$0 sm:$0xff] }
 0x86b   : > { %v2814_v50 = vmul.f32 %v2812_v41, %v2804_v20  ;;  %s3824_s29 = scalar_lea.vmem %s3005_s23, 256 }
 0x86c   : > { %v2832_v28 = vadd.f32 0.01407047, %v2830_v27  ;;  %v2831_v31 = vmul.f32 %v2829_v5, %v2805_v21  ;;  %v2815_v55 = vmul.f32 %v2813_v49, %v2805_v21  ;;  %p3825_p12 = scmp.ne.s32.totalorder %s3005_s23, %s3824_s29  ;;  %p3832_p6 = scmp.lt.s32.totalorder %s3824_s29, %s3824_s29 }
 0x86d   : > { %v2816_v56 = vadd.f32 0.18520832, %v2814_v50 }
 0x86e   : > { %v2834_v32 = vmul.f32 %v2832_v28, %v2804_v20  ;;  %v2833_v33 = vadd.f32 0.01407047, %v2831_v31  ;;  %v2817_v57 = vadd.f32 0.18520832, %v2815_v55  ;;  %p3826_p13 = pnand %p3825_p12, %p3546_p9  ;;  %p3833_p0 = por %p3832_p6, %p3831_p2 }
 0x86f   : > { %v2818_v58 = vmul.f32 %v2816_v56, %v2804_v20 }
 0x870   : > { %v2836_v34 = vadd.f32 0.11098505, %v2834_v32  ;;  %v2835_v38 = vmul.f32 %v2833_v33, %v2805_v21  ;;  %v2819_v62 = vmul.f32 %v2817_v57, %v2805_v21  ;;  %p3827_p8 = pneg %p3826_p13 }
 0x871   : > { %v2820_v63 = vadd.f32 1.1283791, %v2818_v58 }
 0x872   : > { %v2838_v39 = vmul.f32 %v2836_v34, %v2804_v20  ;;  %v2837_v42 = vadd.f32 0.11098505, %v2835_v38  ;;  %v2821_v2 = vadd.f32 1.1283791, %v2819_v62  ;;  %p3834_p1 = pnand %p3833_p0, %p3827_p8 }
 0x873   : > { %v2854_v10 = vmul.f32 %v3314_v18, %v2820_v63  ;;  %v3316_v18 = vld [vmem:[%s707_s11] ss:$0 sm:$0xff] }
 0x874   : > { %v2840_v43 = vadd.f32 0.49746925, %v2838_v39  ;;  %v2839_v44 = vmul.f32 %v2837_v42, %v2805_v21  ;;  %v2855_v14 = vmul.f32 %v3315_v59, %v2821_v2 }
 0x876   : > { %v2842_v45 = vmul.f32 %v2840_v43, %v2804_v20  ;;  %v2841_v46 = vadd.f32 0.49746925, %v2839_v44 }
 0x878   : > { %v2844_v47 = vadd.f32 1.0, %v2842_v45  ;;  %v2843_v53 = vmul.f32 %v2841_v46, %v2805_v21  ;;  %v3323_v45 = vld [vmem:[%s713_s18] ss:$0 sm:$0xff] }
 0x87a   : > { %3666 = vrcp.f32 %v2844_v47  ;;  %v2845_v54 = vadd.f32 1.0, %v2843_v53 }
 0x87c   : > { %3668 = vrcp.f32 %v2845_v54 }
 0x884   : > { %v3667_v61 = vpop.eup %3666 }
 0x885   : > { %v2848_v37 = vmul.f32 %v3667_v61, %v2844_v47 }
 0x886   : > { %v3669_v0 = vpop.eup %3668 }
 0x887   : > { %v2850_v1 = vsub.f32 2.0, %v2848_v37  ;;  %v2849_v8 = vmul.f32 %v3669_v0, %v2845_v54 }
 0x889   : > { %v2852_v9 = vmul.f32 %v3667_v61, %v2850_v1  ;;  %v2851_v11 = vsub.f32 2.0, %v2849_v8 }
 0x88b   : > { %v2856_v12 = vmul.f32 %v2854_v10, %v2852_v9  ;;  %v2853_v13 = vmul.f32 %v3669_v0, %v2851_v11 }
 0x88d   : > { %v2858_v16 = vadd.f32 1.0, %v2856_v12  ;;  %v2857_v48 = vmul.f32 %v2855_v14, %v2853_v13 }
 0x88f   : > { %v2859_v19 = vadd.f32 1.0, %v2857_v48  ;;  %v2860_v20 = vmul.f32 %v2858_v16, %v2796_v51 }
 0x891   : > { %v2861_v60 = vmul.f32 %v2859_v19, %v2797_v17 }
 0x893   : > { %v2862_v21 = vpack.c.bf16 %v2861_v60, %v2860_v20 }
 0x895   : > { %3507 = vmatmul.mubr.msk.bf16.vlgmr.msra.gmra.mrb[36].mxu1 %vm2902_vm7, %v2862_v21 }
 0x968   : > { %v2940_v3 = vpop.f32.mrb[36].mxu1 }
 0x969   : > { %v2941_v22 = vadd.f32 %v3316_v18, %v2940_v3  ;;  %v3508_v23 = vpop.f32.mrb[37].mxu1 }
 0x96a   : > { %v2943_v59 = vpop.f32.mrb[38].mxu1 }
 0x96b   : > { %v2944_v24 = vadd.f32 %v3316_v18, %v2943_v59  ;;  %v3509_v25 = vpop.f32.mrb[39].mxu1  ;;  %v2947_v15 = vadd.f32 %v2941_v22, %v4576_v6 }
 0x96d   : > { %v2951_v52 = vsel %vm751_vm2, %v2947_v15, 0.0  ;;  %v2948_v26 = vadd.f32 %v2944_v24, %v4578_v7 }
 0x96e   : > { %2952 = vadd.xlane.f32.xlu1 %v2951_v52 }
 0x96f   : > { %v2954_v4 = vsel %vm751_vm2, %v2948_v26, 0.0 }
 0x970   : > { %2955 = vadd.xlane.f32.xlu0 %v2954_v4 }
 0x9fb   : > { %v2953_v27 = vpop.xlane.xlu1 %2952 }
 0x9fc   : > { %v2957_v5 = vmul.f32 0.03125, %v2953_v27 }
 0x9fd   : > { %v2956_v28 = vpop.xlane.xlu0 %2955 }
 0x9fe   : > { %v2959_v29 = vsub.f32 %v2947_v15, %v2957_v5  ;;  %v2958_v30 = vmul.f32 0.03125, %v2956_v28 }
 0xa00   : > { %v2960_v31 = vsub.f32 %v2948_v26, %v2958_v30  ;;  %v2961_v32 = vmul.f32 %v2959_v29, %v2959_v29 }
 0xa02   : > { %v2963_v33 = vsel %vm751_vm2, %v2961_v32, 0.0  ;;  %v2962_v34 = vmul.f32 %v2960_v31, %v2960_v31 }
 0xa03   : > { %2964 = vadd.xlane.f32.xlu1 %v2963_v33 }
 0xa04   : > { %v2966_v6 = vsel %vm751_vm2, %v2962_v34, 0.0 }
 0xa05   : > { %2967 = vadd.xlane.f32.xlu0 %v2966_v6 }
 0xa90   : > { %v2965_v7 = vpop.xlane.xlu1 %2964 }
 0xa91   : > { %v2969_v35 = vmul.f32 0.03125, %v2965_v7 }
 0xa92   : > { %v2968_v36 = vpop.xlane.xlu0 %2967 }
 0xa93   : > { %v2971_v38 = vadd.f32 1e-05, %v2969_v35  ;;  %v2970_v39 = vmul.f32 0.03125, %v2968_v36 }
 0xa95   : > { %3670 = vrsqrt.f32 %v2971_v38  ;;  %v2972_v42 = vadd.f32 1e-05, %v2970_v39 }
 0xa97   : > { %3672 = vrsqrt.f32 %v2972_v42 }
 0xa9f   : > { %v3671_v43 = vpop.eup %3670 }
 0xaa0   : > { %v2975_v41 = vmul.f32 %v3671_v43, %v2959_v29 }
 0xaa1   : > { %v3673_v44 = vpop.eup %3672 }
 0xaa2   : > { %v2983_v46 = vmul.f32 %v3322_v40, %v2975_v41  ;;  %v2976_v47 = vmul.f32 %v3673_v44, %v2960_v31 }
 0xaa4   : > { %v2984_v49 = vmul.f32 %v3322_v40, %v2976_v47  ;;  %v2991_v50 = vadd.f32 %v3323_v45, %v2983_v46 }
 0xaa6   : > { %v2992_v53 = vadd.f32 %v3323_v45, %v2984_v49  ;;  %2993 = vst.msk [vmem:[#allocation11] sm:$0xff] %vm751_vm2, %v2991_v50 }
 0xaa8   : > { %2994 = vst.msk [vmem:[#allocation11 + $0x8] sm:$0xff] %vm751_vm2, %v2992_v53 }
 0xaa9   : > { %3837 = shalt.err (!%p3834_p1)
}
 0xaaa   : > { %s4735_s15 = sld [smem:[#allocation31_spill]] }
 0xab0   : > { %s3838_s19 = scalar_lea.hbm %s4735_s15, 256 }
 0xab1   : > { %p3839_p7 = scmp.ne.s32.totalorder %s4735_s15, %s3838_s19  ;;  %p3844_p5 = scmp.lt.u32.totalorder %s3838_s19, %s4735_s15 }
 0xab3   : > { %p3840_p10 = pnand %p3839_p7, %p3546_p9 }
 0xab5   : > { %p3841_p11 = pneg %p3840_p10 }
 0xab7   : > { %p3846_p3 = pnand %p3844_p5, %p3841_p11 }
 0xab9   : > { %3849 = shalt.err (!%p3846_p3)
}
 0xaba   : > { %s3941_s20 = smov 128  }
 0xabb   : > { %3523 = dma.vmem_to_hbm [thread:$0]  (%p3546_p9), %s3005_s23, 256, %s4735_s15, [#allocation4], %s3941_s20, %s3941_s20, %s3937_s24  }
 0xabc   : > { %3887 = dma.done.wait (%p3546_p9), [#allocation4], 256  }
 0xabd   : > { %3889 = vsyncadd (%p3546_p9), [#allocation4], 4294967040 }
 0xabe PF: > { %s4736_s0 = sld [smem:[#allocation18_spill]]  ;;  %s4737_s10 = sld [smem:[#allocation16_spill]] }
 0xabf   : > { %s4738_s27 = sld [smem:[#allocation20_spill]]  ;;  %s4739_s28 = sld [smem:[#allocation17_spill]] }
 0xac0   : > { %s4740_s29 = sld [smem:[#allocation19_spill]]  ;;  %s4741_s25 = smov %s3896_s26 }
 0xac4   : > { %s31_s30 = sadd.s32 1, %s4736_s0   ;;  %s4742_s26 = smov %s4737_s10 }
 0xac5   : > { %p28_p4 = scmp.ge.s32.totalorder %s31_s30, 4  }
 0xac7   :  { %30 = sbr.rel (!%p28_p4) target bundleno = 20 (0x14), region = 179 }
 0xace   :  { %3020 = vsyncpa [#allocation3], 1 }
 0xacf   :  { %3022 = vsyncpa [#allocation3 + $0x1], 1 }
 0xad0   :  { %3023 = vsyncpa [#allocation6], 1 }
 0xad1   :  { %3025 = vsyncpa [#allocation6 + $0x1], 1 }
 0xad2   :  { %3026 = vsyncpa [#allocation9], 1 }
 0xad3   :  { %3028 = vsyncpa [#allocation9 + $0x1], 1 }
 0xad4   :  { %3029 = vsyncpa [#allocation4], 1 }
 0xad5   :  { %3031 = vsyncpa [#allocation4 + $0x1], 1 }

</bundles_post_ra>
